<compile_context>
chip_gen: v6e
topology: v6e:2x2x1
jax: 0.10.0
libtpu: 0.0.40
codegen_flags: <defaults>
</compile_context>

<pallas_src>
import math

import jax
import jax.numpy as jnp
from jax import lax
from jax.experimental import pallas as pl
from jax.experimental.pallas import tpu as pltpu


def make_decoder_kernel(n_layers, out_dim, use_bf16_matmul):
    """Build the fused MLP kernel. All shape parameters are static ints."""
    mm_dtype = jnp.bfloat16 if use_bf16_matmul else jnp.float32

    def kernel(x_ref, w0_ref, w_ref, b_ref, o_ref):
        # x_ref : (bt, in0)                       -- streamed batch tile (HBM layout, no wrapper transpose)
        # w0_ref: (feat_pad, in0)                 -- layer-0 weight, PyTorch (out, in) layout
        # w_ref : (n_layers-1, feat_pad, feat_pad)-- remaining weights, zero-padded slabs
        # b_ref : (n_layers, feat_pad, 1)         -- zero-padded biases
        # o_ref : (out_dim, bt)                   -- batch on the lane axis -> lane-dense stores
        x_blk = x_ref[...].astype(mm_dtype)
        w0 = w0_ref[...].astype(mm_dtype)

        # Layer 0: contract the feature dim of BOTH operands (A @ B^T pattern);
        # result is (feat_pad, bt) so the batch sits on the 128-wide lane axis.
        z = lax.dot_general(
            w0, x_blk,
            dimension_numbers=(((1,), (1,)), ((), ())),
            preferred_element_type=jnp.float32)
        z = z + b_ref[0]
        h = jnp.maximum(z, 0.4 * z)                       # LeakyReLU(0.4)

        for li in range(1, n_layers):
            z = jnp.dot(w_ref[li - 1].astype(mm_dtype), h.astype(mm_dtype),
                        preferred_element_type=jnp.float32) + b_ref[li]
            if li < n_layers - 1:
                h = jnp.maximum(z, 0.4 * z)               # LeakyReLU(0.4)
            else:
                # sigmoid: exp + approx reciprocal -> both on the EUP slot
                h = pl.reciprocal(1.0 + jnp.exp(-z), approx=True)

        # Padded rows of the last layer give sigmoid(0)=0.5 -> slice them away
        # before the store.
        o_ref[...] = h[0:out_dim, :]

    return kernel


def decoder_forward(x, w0, w_rest, b_pack, layer_dims, *,
                    batch_tile=2048, use_bf16_matmul=True):
    """x: (B, hidden_size[0]) float32. Returns (B, output_size) float32."""
    B, in0 = x.shape
    assert in0 == layer_dims[0][0]
    n_layers = len(layer_dims)
    out_dim = layer_dims[-1][1]

    # Tile selection: as large as useful, but cap so the "parallel" grid axis
    # keeps >= 2 steps (both v7x TensorCores get work; harmless on v5e/v6e).
    half = max(128, (((B + 1) // 2) + 127) // 128 * 128)
    bt = max(128, min(batch_tile, half))
    B_pad = (B + bt - 1) // bt * bt
    if B_pad != B:
        x = jnp.pad(x, ((0, B_pad - B), (0, 0)))

    kernel = make_decoder_kernel(n_layers, out_dim, use_bf16_matmul)

    flops = 2 * sum(din * dout for din, dout in layer_dims) * B_pad
    bytes_accessed = 4 * (B_pad * in0 + int(w0.size) + int(w_rest.size)
                          + int(b_pack.size) + out_dim * B_pad)
    cost = pl.CostEstimate(flops=int(flops),
                           transcendentals=int(B_pad * out_dim),
                           bytes_accessed=int(bytes_accessed))

    o_t = pl.pallas_call(
        kernel,
        out_shape=jax.ShapeDtypeStruct((out_dim, B_pad), jnp.float32),
        grid_spec=pltpu.PrefetchScalarGridSpec(
            num_scalar_prefetch=0,
            grid=(B_pad // bt,),
            in_specs=[
                pl.BlockSpec((bt, in0), lambda i: (i, 0)),          # x: only streamed operand
                pl.BlockSpec(w0.shape, lambda i: (0, 0)),            # resident weights
                pl.BlockSpec(w_rest.shape, lambda i: (0, 0, 0)),
                pl.BlockSpec(b_pack.shape, lambda i: (0, 0, 0)),
            ],
            out_specs=pl.BlockSpec((out_dim, bt), lambda i: (0, i)),
        ),
        compiler_params=pltpu.CompilerParams(
            dimension_semantics=("parallel",)),
        cost_estimate=cost,
    )(x, w0, w_rest, b_pack)

    # Output is only out_dim rows (~32 B per batch element): transposing it back
    # here is negligible next to streaming x, and keeps in-kernel stores lane-dense.
    return o_t.T[:B]


def init_decoder_params(key, hidden_size, output_size, feat_pad=128):
    """Xavier-uniform weights (PyTorch (out, in) layout), zero biases, packed/padded."""
    dims = list(hidden_size) + [output_size]
    layer_dims = [(dims[i], dims[i + 1]) for i in range(len(dims) - 1)]  # (in, out)
    n_layers = len(layer_dims)
    feat_pad = max([feat_pad] + [d for pair in layer_dims for d in pair])
    feat_pad = ((feat_pad + 127) // 128) * 128   # match the 128x128 MXU tile

    in0 = layer_dims[0][0]
    w0 = jnp.zeros((feat_pad, in0), jnp.float32)
    w_rest = jnp.zeros((n_layers - 1, feat_pad, feat_pad), jnp.float32)
    b_pack = jnp.zeros((n_layers, feat_pad, 1), jnp.float32)

    for li, (fan_in, fan_out) in enumerate(layer_dims):
        key, sub = jax.random.split(key)
        bound = math.sqrt(6.0 / (fan_in + fan_out))
        w = jax.random.uniform(sub, (fan_out, fan_in), jnp.float32,
                               minval=-bound, maxval=bound)
        if li == 0:
            w0 = w0.at[:fan_out, :fan_in].set(w)
        else:
            w_rest = w_rest.at[li - 1, :fan_out, :fan_in].set(w)
        # biases stay zero (nn.init.constant_(bias, 0.0))
    return w0, w_rest, b_pack, layer_dims


def decoder_reference(x, w0, w_rest, b_pack, layer_dims,
                      matmul_dtype=jnp.float32):
    """Plain-JAX reference in the natural (B, feat) orientation."""
    h = x
    n = len(layer_dims)
    for li, (din, dout) in enumerate(layer_dims):
        w = (w0 if li == 0 else w_rest[li - 1])[:dout, :din]   # (out, in)
        b = b_pack[li, :dout, 0]
        z = jnp.dot(h.astype(matmul_dtype), w.astype(matmul_dtype).T,
                    preferred_element_type=jnp.float32) + b
        if li < n - 1:
            h = jnp.where(z >= 0, z, 0.4 * z)
        else:
            h = jax.nn.sigmoid(z)
    return h


if __name__ == "__main__":
    key = jax.random.PRNGKey(0)

    hidden_size = [32, 64, 48, 32, 16]
    output_size = 8
    batch = 512   # small demo; tile auto-caps to 256 -> grid=2 ("parallel" over v7x TCs)

    kp, kx = jax.random.split(key)
    w0, w_rest, b_pack, layer_dims = init_decoder_params(kp, hidden_size, output_size)
    x = jax.random.normal(kx, (batch, hidden_size[0]), jnp.float32)

    ref_f32 = decoder_reference(x, w0, w_rest, b_pack, layer_dims)

    # 1) f32-MXU path: validates exact forward semantics of the PyTorch module
    #    (only the EUP approx reciprocal in the sigmoid loosens the tolerance).
    out_f32 = decoder_forward(x, w0, w_rest, b_pack, layer_dims,
                              use_bf16_matmul=False)
    out_f32 = jax.block_until_ready(out_f32)
    assert out_f32.shape == (batch, output_size)
    assert jnp.allclose(out_f32, ref_f32, atol=2e-3, rtol=2e-3), "f32 mismatch vs reference"

    # 2) default bf16-operand path (faster on the bf16-native v6e/v7x MXUs),
    #    checked against a reference using the same matmul dtype.
    out_bf16 = decoder_forward(x, w0, w_rest, b_pack, layer_dims)
    out_bf16 = jax.block_until_ready(out_bf16)
    ref_bf16 = decoder_reference(x, w0, w_rest, b_pack, layer_dims,
                                 matmul_dtype=jnp.bfloat16)
    assert out_bf16.shape == (batch, output_size)
    assert jnp.allclose(out_bf16, ref_bf16, atol=2e-3, rtol=2e-3), "bf16 mismatch vs reference"

    print("KERNEL_OK")
</pallas_src>

<mosaic_0001>
module attributes {stable_mosaic.version = 11 : i64} {
  func.func @kernel(%arg0: i32, %arg1: memref<256x32xf32, #tpu.memory_space<vmem>>, %arg2: memref<128x32xf32, #tpu.memory_space<vmem>>, %arg3: memref<4x128x128xf32, #tpu.memory_space<vmem>>, %arg4: memref<5x128x1xf32, #tpu.memory_space<vmem>>, %arg5: memref<8x256xf32, #tpu.memory_space<vmem>>) attributes {dimension_semantics = [#tpu.dimension_semantics<parallel>], iteration_bounds = array<i64: 2>, scalar_prefetch = 0 : i64, scratch_operands = 0 : i64, tpu.core_type = #tpu.core_type<tc>, window_params = [{transform_indices = @transform_0, window_bounds = array<i64: 256, 32>}, {pipeline_mode = #tpu.pipeline_mode<synchronous>, transform_indices = @transform_1, window_bounds = array<i64: 128, 32>}, {pipeline_mode = #tpu.pipeline_mode<synchronous>, transform_indices = @transform_2, window_bounds = array<i64: 4, 128, 128>}, {pipeline_mode = #tpu.pipeline_mode<synchronous>, transform_indices = @transform_3, window_bounds = array<i64: 5, 128, 1>}, {transform_indices = @transform_4, window_bounds = array<i64: 8, 256>}]} {
    %c0 = arith.constant 0 : index
    %c0_0 = arith.constant 0 : index
    %0 = vector.load %arg1[%c0, %c0_0] : memref<256x32xf32, #tpu.memory_space<vmem>>, vector<256x32xf32>
    %c0_1 = arith.constant 0 : index
    %c0_2 = arith.constant 0 : index
    %1 = vector.load %arg2[%c0_1, %c0_2] : memref<128x32xf32, #tpu.memory_space<vmem>>, vector<128x32xf32>
    %cst = arith.constant dense<0.000000e+00> : vector<128x256xf32>
    %2 = tpu.matmul %1, %0, %cst {dimension_numbers = #tpu.dot_dimension_numbers<[1], [1], [0], [0], [0, 0, 1, 0], [], []>} : vector<128x32xf32>, vector<256x32xf32>, vector<128x256xf32> -> vector<128x256xf32>
    %c0_3 = arith.constant 0 : index
    %c0_4 = arith.constant 0 : index
    %c0_5 = arith.constant 0 : index
    %3 = vector.load %arg4[%c0_3, %c0_4, %c0_5] : memref<5x128x1xf32, #tpu.memory_space<vmem>>, vector<1x128x1xf32>
    %4 = vector.shape_cast %3 : vector<1x128x1xf32> to vector<128x1xf32>
    %5 = vector.broadcast %4 : vector<128x1xf32> to vector<128x256xf32>
    %6 = arith.addf %2, %5 : vector<128x256xf32>
    %cst_6 = arith.constant 4.000000e-01 : f32
    %7 = vector.broadcast %cst_6 : f32 to vector<128x256xf32>
    %8 = arith.mulf %7, %6 : vector<128x256xf32>
    %9 = arith.maximumf %6, %8 : vector<128x256xf32>
    %c0_7 = arith.constant 0 : index
    %c0_8 = arith.constant 0 : index
    %c0_9 = arith.constant 0 : index
    %10 = vector.load %arg3[%c0_7, %c0_8, %c0_9] : memref<4x128x128xf32, #tpu.memory_space<vmem>>, vector<1x128x128xf32>
    %11 = vector.shape_cast %10 : vector<1x128x128xf32> to vector<128x128xf32>
    %cst_10 = arith.constant dense<0.000000e+00> : vector<128x256xf32>
    %12 = tpu.matmul %11, %9, %cst_10 {dimension_numbers = #tpu.dot_dimension_numbers<[1], [0], [0], [1], [0, 0, 1, 1], [], []>} : vector<128x128xf32>, vector<128x256xf32>, vector<128x256xf32> -> vector<128x256xf32>
    %c1 = arith.constant 1 : index
    %c0_11 = arith.constant 0 : index
    %c0_12 = arith.constant 0 : index
    %13 = vector.load %arg4[%c1, %c0_11, %c0_12] : memref<5x128x1xf32, #tpu.memory_space<vmem>>, vector<1x128x1xf32>
    %14 = vector.shape_cast %13 : vector<1x128x1xf32> to vector<128x1xf32>
    %15 = vector.broadcast %14 : vector<128x1xf32> to vector<128x256xf32>
    %16 = arith.addf %12, %15 : vector<128x256xf32>
    %cst_13 = arith.constant 4.000000e-01 : f32
    %17 = vector.broadcast %cst_13 : f32 to vector<128x256xf32>
    %18 = arith.mulf %17, %16 : vector<128x256xf32>
    %19 = arith.maximumf %16, %18 : vector<128x256xf32>
    %c1_14 = arith.constant 1 : index
    %c0_15 = arith.constant 0 : index
    %c0_16 = arith.constant 0 : index
    %20 = vector.load %arg3[%c1_14, %c0_15, %c0_16] : memref<4x128x128xf32, #tpu.memory_space<vmem>>, vector<1x128x128xf32>
    %21 = vector.shape_cast %20 : vector<1x128x128xf32> to vector<128x128xf32>
    %cst_17 = arith.constant dense<0.000000e+00> : vector<128x256xf32>
    %22 = tpu.matmul %21, %19, %cst_17 {dimension_numbers = #tpu.dot_dimension_numbers<[1], [0], [0], [1], [0, 0, 1, 1], [], []>} : vector<128x128xf32>, vector<128x256xf32>, vector<128x256xf32> -> vector<128x256xf32>
    %c2 = arith.constant 2 : index
    %c0_18 = arith.constant 0 : index
    %c0_19 = arith.constant 0 : index
    %23 = vector.load %arg4[%c2, %c0_18, %c0_19] : memref<5x128x1xf32, #tpu.memory_space<vmem>>, vector<1x128x1xf32>
    %24 = vector.shape_cast %23 : vector<1x128x1xf32> to vector<128x1xf32>
    %25 = vector.broadcast %24 : vector<128x1xf32> to vector<128x256xf32>
    %26 = arith.addf %22, %25 : vector<128x256xf32>
    %cst_20 = arith.constant 4.000000e-01 : f32
    %27 = vector.broadcast %cst_20 : f32 to vector<128x256xf32>
    %28 = arith.mulf %27, %26 : vector<128x256xf32>
    %29 = arith.maximumf %26, %28 : vector<128x256xf32>
    %c2_21 = arith.constant 2 : index
    %c0_22 = arith.constant 0 : index
    %c0_23 = arith.constant 0 : index
    %30 = vector.load %arg3[%c2_21, %c0_22, %c0_23] : memref<4x128x128xf32, #tpu.memory_space<vmem>>, vector<1x128x128xf32>
    %31 = vector.shape_cast %30 : vector<1x128x128xf32> to vector<128x128xf32>
    %cst_24 = arith.constant dense<0.000000e+00> : vector<128x256xf32>
    %32 = tpu.matmul %31, %29, %cst_24 {dimension_numbers = #tpu.dot_dimension_numbers<[1], [0], [0], [1], [0, 0, 1, 1], [], []>} : vector<128x128xf32>, vector<128x256xf32>, vector<128x256xf32> -> vector<128x256xf32>
    %c3 = arith.constant 3 : index
    %c0_25 = arith.constant 0 : index
    %c0_26 = arith.constant 0 : index
    %33 = vector.load %arg4[%c3, %c0_25, %c0_26] : memref<5x128x1xf32, #tpu.memory_space<vmem>>, vector<1x128x1xf32>
    %34 = vector.shape_cast %33 : vector<1x128x1xf32> to vector<128x1xf32>
    %35 = vector.broadcast %34 : vector<128x1xf32> to vector<128x256xf32>
    %36 = arith.addf %32, %35 : vector<128x256xf32>
    %cst_27 = arith.constant 4.000000e-01 : f32
    %37 = vector.broadcast %cst_27 : f32 to vector<128x256xf32>
    %38 = arith.mulf %37, %36 : vector<128x256xf32>
    %39 = arith.maximumf %36, %38 : vector<128x256xf32>
    %c3_28 = arith.constant 3 : index
    %c0_29 = arith.constant 0 : index
    %c0_30 = arith.constant 0 : index
    %40 = vector.load %arg3[%c3_28, %c0_29, %c0_30] : memref<4x128x128xf32, #tpu.memory_space<vmem>>, vector<1x128x128xf32>
    %41 = vector.shape_cast %40 : vector<1x128x128xf32> to vector<128x128xf32>
    %cst_31 = arith.constant dense<0.000000e+00> : vector<128x256xf32>
    %42 = tpu.matmul %41, %39, %cst_31 {dimension_numbers = #tpu.dot_dimension_numbers<[1], [0], [0], [1], [0, 0, 1, 1], [], []>} : vector<128x128xf32>, vector<128x256xf32>, vector<128x256xf32> -> vector<128x256xf32>
    %c4 = arith.constant 4 : index
    %c0_32 = arith.constant 0 : index
    %c0_33 = arith.constant 0 : index
    %43 = vector.load %arg4[%c4, %c0_32, %c0_33] : memref<5x128x1xf32, #tpu.memory_space<vmem>>, vector<1x128x1xf32>
    %44 = vector.shape_cast %43 : vector<1x128x1xf32> to vector<128x1xf32>
    %45 = vector.broadcast %44 : vector<128x1xf32> to vector<128x256xf32>
    %46 = arith.addf %42, %45 : vector<128x256xf32>
    %cst_34 = arith.constant 0.000000e+00 : f32
    %47 = vector.broadcast %cst_34 : f32 to vector<128x256xf32>
    %48 = arith.subf %47, %46 : vector<128x256xf32>
    %49 = math.exp %48 : vector<128x256xf32>
    %cst_35 = arith.constant 1.000000e+00 : f32
    %50 = vector.broadcast %cst_35 : f32 to vector<128x256xf32>
    %51 = arith.addf %50, %49 : vector<128x256xf32>
    %52 = tpu.reciprocal %51 {approx = true} : vector<128x256xf32> -> vector<128x256xf32>
    %53 = vector.extract_strided_slice %52 {offsets = [0, 0], sizes = [8, 256], strides = [1, 1]} : vector<128x256xf32> to vector<8x256xf32>
    %c0_36 = arith.constant 0 : index
    %c0_37 = arith.constant 0 : index
    %54 = vector.load %arg5[%c0_36, %c0_37] : memref<8x256xf32, #tpu.memory_space<vmem>>, vector<8x256xf32>
    tpu.vector_store %arg5[%c0_36, %c0_37], %53 {strides = array<i32>} : memref<8x256xf32, #tpu.memory_space<vmem>>, vector<8x256xf32>,
    return
  }
  func.func @transform_0(%arg0: i32) -> (i32, i32) {
    %c0_i32 = arith.constant 0 : i32
    %c0_i32_0 = arith.constant 0 : i32
    return %arg0, %c0_i32 : i32, i32
  }
  func.func @transform_1(%arg0: i32) -> (i32, i32) {
    %c0_i32 = arith.constant 0 : i32
    %c0_i32_0 = arith.constant 0 : i32
    %c0_i32_1 = arith.constant 0 : i32
    return %c0_i32, %c0_i32_0 : i32, i32
  }
  func.func @transform_2(%arg0: i32) -> (i32, i32, i32) {
    %c0_i32 = arith.constant 0 : i32
    %c0_i32_0 = arith.constant 0 : i32
    %c0_i32_1 = arith.constant 0 : i32
    %c0_i32_2 = arith.constant 0 : i32
    return %c0_i32, %c0_i32_0, %c0_i32_1 : i32, i32, i32
  }
  func.func @transform_3(%arg0: i32) -> (i32, i32, i32) {
    %c0_i32 = arith.constant 0 : i32
    %c0_i32_0 = arith.constant 0 : i32
    %c0_i32_1 = arith.constant 0 : i32
    %c0_i32_2 = arith.constant 0 : i32
    return %c0_i32, %c0_i32_0, %c0_i32_1 : i32, i32, i32
  }
  func.func @transform_4(%arg0: i32) -> (i32, i32) {
    %c0_i32 = arith.constant 0 : i32
    %c0_i32_0 = arith.constant 0 : i32
    return %c0_i32, %arg0 : i32, i32
  }
}

</mosaic_0001>

<bundles_post_ra>
// kernel: tpu_custom_call.1
= control target key start
LH: loop header
LB: loop body
LE: loop exit
PB: predicated region body
PF: predicated region fallthrough
CT: control target
= control target key end

     0   :  { %9 = vsyncpa [#allocation3], 0  ;;  %s3361_s0 = inlined_call_operand.vmem [shape: f32[512,32], index: 0, kind: input, shape index: {}]   ;;  %s3362_s1 = inlined_call_operand.vmem [shape: f32[128,32], index: 1, kind: input, shape index: {}]   ;;  %s3363_s2 = inlined_call_operand.vmem [shape: f32[4,128,128], index: 2, kind: input, shape index: {}]   ;;  %s3364_s3 = inlined_call_operand.vmem [shape: f32[5,128,1], index: 3, kind: input, shape index: {}]   ;;  %s3365_s4 = inlined_call_operand.hbm [shape: f32[8,512], index: 4, kind: output, shape index: {}]  }
   0x1   :  { %11 = vsyncpa [#allocation3 + $0x1], 0  ;;  %s2455_s15 = smov 0   ;;  %s2457_s16 = smov 0  }
   0x2   :  { %s2459_s17 = smov 0   ;;  %s2461_s18 = smov 0  }
   0x3 LB: > { %s2476_s19 = sadd.s32 4294967295, %s2425_s18   ;;  %s2045_s20 = sadd.s32 4294967294, %s2425_s18   ;;  %s2425_s18 = sphi %s2461_s18, %s3371_s18   ;;  %s2421_s17 = sphi %s2459_s17, %s3370_s17   ;;  %s2417_s16 = sphi %s2457_s16, %s3369_s16   ;;  %s2413_s15 = sphi %s2455_s15, %s3368_s15  }
   0x4   : > { %s2480_s21 = sadd.s32 1, %s2425_s18   ;;  %s113_s22 = sadd.s32 1, %s2421_s17 }
   0x5   : > { %s110_s23 = ssub.s32 %s2425_s18, %s2480_s21  ;;  %p123_p0 = scmp.ne.s32.totalorder %s2421_s17, %s2417_s16 }
   0x6   : > { %p111_p1 = scmp.eq.s32.totalorder %s110_s23, 0  ;;  %p124_p2 = scmp.eq.s32.totalorder %s2476_s19, 1 }
   0x7   : > { %p129_p3 = scmp.ne.s32.totalorder %s2417_s16, %s2413_s15  ;;  %p130_p4 = scmp.eq.s32.totalorder %s2045_s20, 1 }
   0x8   : > { %s2491_s24 = scalar_select %p111_p1, %s2421_s17, %s113_s22  }
   0x9   : > { %p2493_p5 = por %p124_p2, %p123_p0  ;;  %p2497_p6 = por %p130_p4, %p129_p3 }
   0xa   : > { %p2048_p7 = scmp.ge.s32.totalorder %s2425_s18, 1  ;;  %p166_p8 = scmp.lt.s32.totalorder %s2425_s18, 3 }
   0xc   : > { %p167_p9 = pnand %p2048_p7, %p166_p8 }
   0xd   : > { %s2050_s27 = sshll.u32 (!%p167_p9), %s2476_s19, 5  ;;  %s189_s10 = sand.u32 (!%p167_p9), 1, %s2417_s16  }
   0xe   : > { %170 = sbr.rel (%p167_p9) target bundleno = 1508 (0x5e4), region = 36  ;;  %p193_p10 = scmp.lt.s32.totalorder (!%p167_p9), %s2050_s27, 63 }
   0xf   : > { %s2049_s11 = sshll.u32 (!%p167_p9), %s189_s10, 4 }
  0x10   : > { %s191_s13 = scalar_lea.vmem (!%p167_p9), [#allocation2], %s2049_s11 }
  0x11   : > { %s1986_s14 = sshll.u32 (!%p167_p9), %s191_s13, 4  ;;  %s3322_s14 = int_to_ptr.vmem [resolvable:$true] %s1986_s14 }
  0x12   : > { %s2365_s28 = scalar_lea.vmem (!%p167_p9), %s3322_s14, 256 }
  0x13   : > { %vm343_vm0 = vcmask 261120   ;;  %v2507_v0 = vld [vmem:[%s3362_s1] sm:$0xff]  ;;  %v262_v1 = vld [vmem:[%s3364_s3 + $0x78] sm:$0xff]  ;;  %v2427_v2 = vmov 0   ;;  %v260_v3 = vld [vmem:[%s3364_s3 + $0x68] sm:$0xff]  ;;  %s3373_s27 = smov (!%p193_p10, %s2050_s27), 63  ;;  %p2366_p11 = scmp.ne.s32.totalorder %s3322_s14, %s2365_s28 }
  0x14   : > { %2250 = vmatprep.mubr.msk.f32.mxu0 %vm343_vm0, %v2507_v0  ;;  %2355 = vset.pattern.permute.xlu0 %v2427_v2  ;;  %v261_v4 = vld [vmem:[%s3364_s3 + $0x70] sm:$0xff]  ;;  %v259_v5 = vld [vmem:[%s3364_s3 + $0x60] sm:$0xff]  ;;  %s2051_s12 = sshll.u32 %s3373_s27, 3  ;;  %v258_v6 = vld [vmem:[%s3364_s3 + $0x58] sm:$0xff] }
  0x15   : > { %340 = vperm.xlu0 %2355, %v262_v1   ;;  %2356 = vset.pattern.permute.xlu1 %v2427_v2  ;;  %s2526_s20 = scalar_lea.vmem %s3361_s0, %s2051_s12  ;;  %v257_v10 = vld [vmem:[%s3364_s3 + $0x50] sm:$0xff]  ;;  %v256_v13 = vld [vmem:[%s3364_s3 + $0x48] sm:$0xff]  ;;  %v255_v14 = vld [vmem:[%s3364_s3 + $0x40] sm:$0xff]  ;;  %s2217_s12 = sshll.u32 %s2476_s19, 8 }
  0x16   : > { %330 = vperm.xlu1 %2356, %v260_v3   ;;  %v230_v7 = vld [vmem:[%s2526_s20 + $0xf8] sm:$0xff]  ;;  %v229_v9 = vld [vmem:[%s2526_s20 + $0xf0] sm:$0xff]  ;;  %v228_v12 = vld [vmem:[%s2526_s20 + $0xe8] sm:$0xff]  ;;  %s3320_s27 = scalar_lea.hbm %s3365_s4, %s2217_s12  ;;  %s1972_s19 = scalar_lea.sflag [#allocation3], %s189_s10 }
  0x17   : > { %v214_v8 = vld [vmem:[%s2526_s20 + $0x78] sm:$0xff]  ;;  %2218 = vmatprep.subr.msk.mxu0 %vm343_vm0, %v230_v7  ;;  %v213_v11 = vld [vmem:[%s2526_s20 + $0x70] sm:$0xff]  ;;  %v212_v15 = vld [vmem:[%s2526_s20 + $0x68] sm:$0xff]  ;;  %p2367_p12 = pnand %p2366_p11, %p2493_p5 }
  0x18   : > { %2219 = vmatpush3.xpose.msk.msra.mxu0 %vm343_vm0, %v214_v8  ;;  %v227_v16 = vld [vmem:[%s2526_s20 + $0xe0] sm:$0xff]  ;;  %v254_v17 = vld [vmem:[%s3364_s3 + $0x38] sm:$0xff]  ;;  %v253_v18 = vld [vmem:[%s3364_s3 + $0x30] sm:$0xff] }
  0x19   : > { %335 = vperm.xlu0 %2355, %v261_v4   ;;  %2220 = vmatprep.subr.msk.mxu0 %vm343_vm0, %v229_v9  ;;  %v211_v19 = vld [vmem:[%s2526_s20 + $0x60] sm:$0xff]  ;;  %v226_v20 = vld [vmem:[%s2526_s20 + $0xd8] sm:$0xff]  ;;  %v252_v21 = vld [vmem:[%s3364_s3 + $0x28] sm:$0xff]  ;;  %p2368_p13 = pneg %p2367_p12 }
  0x1a   : > { %325 = vperm.xlu1 %2356, %v259_v5   ;;  %v251_v22 = vld [vmem:[%s3364_s3 + $0x20] sm:$0xff]  ;;  %v210_v23 = vld [vmem:[%s2526_s20 + $0x58] sm:$0xff]  ;;  %v225_v24 = vld [vmem:[%s2526_s20 + $0xd0] sm:$0xff] }
  0x1b   : > { %v250_v25 = vld [vmem:[%s3364_s3 + $0x18] sm:$0xff]  ;;  %v249_v26 = vld [vmem:[%s3364_s3 + $0x10] sm:$0xff]  ;;  %v224_v28 = vld [vmem:[%s2526_s20 + $0xc8] sm:$0xff] }
  0x1c   : > { %2221 = vmatpush3.xpose.msk.msra.mxu0 %vm343_vm0, %v213_v11  ;;  %v209_v27 = vld [vmem:[%s2526_s20 + $0x50] sm:$0xff]  ;;  %v248_v29 = vld [vmem:[%s3364_s3 + $0x8] sm:$0xff]  ;;  %v247_v30 = vld [vmem:[%s3364_s3] sm:$0xff] }
  0x1d   : > { %320 = vperm.xlu0 %2355, %v258_v6   ;;  %2222 = vmatprep.subr.msk.mxu0 %vm343_vm0, %v228_v12  ;;  %v208_v31 = vld [vmem:[%s2526_s20 + $0x48] sm:$0xff]  ;;  %v223_v32 = vld [vmem:[%s2526_s20 + $0xc0] sm:$0xff]  ;;  %v2115_v33 = vld [vmem:[%s3364_s3 + $0xf8] sm:$0xff] }
  0x1e   : > { %315 = vperm.xlu1 %2356, %v257_v10   ;;  %v2114_v34 = vld [vmem:[%s3364_s3 + $0xf0] sm:$0xff]  ;;  %v207_v35 = vld [vmem:[%s2526_s20 + $0x40] sm:$0xff]  ;;  %v222_v36 = vld [vmem:[%s2526_s20 + $0xb8] sm:$0xff] }
  0x1f   : > { %v2113_v37 = vld [vmem:[%s3364_s3 + $0xe8] sm:$0xff]  ;;  %v2112_v38 = vld [vmem:[%s3364_s3 + $0xe0] sm:$0xff]  ;;  %v206_v39 = vld [vmem:[%s2526_s20 + $0x38] sm:$0xff] }
  0x20   : > { %2223 = vmatpush3.xpose.msk.msra.mxu0 %vm343_vm0, %v212_v15  ;;  %v221_v40 = vld [vmem:[%s2526_s20 + $0xb0] sm:$0xff]  ;;  %v2111_v41 = vld [vmem:[%s3364_s3 + $0xd8] sm:$0xff]  ;;  %v220_v44 = vld [vmem:[%s2526_s20 + $0xa8] sm:$0xff] }
  0x21   : > { %310 = vperm.xlu0 %2355, %v256_v13   ;;  %2224 = vmatprep.subr.msk.mxu0 %vm343_vm0, %v227_v16  ;;  %v2110_v42 = vld [vmem:[%s3364_s3 + $0xd0] sm:$0xff]  ;;  %v2109_v45 = vld [vmem:[%s3364_s3 + $0xc8] sm:$0xff]  ;;  %v2108_v46 = vld [vmem:[%s3364_s3 + $0xc0] sm:$0xff] }
  0x22   : > { %305 = vperm.xlu1 %2356, %v255_v14   ;;  %v205_v43 = vld [vmem:[%s2526_s20 + $0x30] sm:$0xff]  ;;  %v204_v47 = vld [vmem:[%s2526_s20 + $0x28] sm:$0xff]  ;;  %v219_v48 = vld [vmem:[%s2526_s20 + $0xa0] sm:$0xff] }
  0x23   : > { %v2107_v49 = vld [vmem:[%s3364_s3 + $0xb8] sm:$0xff]  ;;  %v2106_v50 = vld [vmem:[%s3364_s3 + $0xb0] sm:$0xff]  ;;  %v203_v51 = vld [vmem:[%s2526_s20 + $0x20] sm:$0xff] }
  0x24   : > { %2225 = vmatpush3.xpose.msk.msra.mxu0 %vm343_vm0, %v211_v19  ;;  %v218_v52 = vld [vmem:[%s2526_s20 + $0x98] sm:$0xff]  ;;  %v2105_v53 = vld [vmem:[%s3364_s3 + $0xa8] sm:$0xff]  ;;  %v2104_v54 = vld [vmem:[%s3364_s3 + $0xa0] sm:$0xff] }
  0x25   : > { %300 = vperm.xlu0 %2355, %v254_v17   ;;  %2226 = vmatprep.subr.msk.mxu0 %vm343_vm0, %v226_v20  ;;  %v202_v55 = vld [vmem:[%s2526_s20 + $0x18] sm:$0xff]  ;;  %v217_v56 = vld [vmem:[%s2526_s20 + $0x90] sm:$0xff]  ;;  %v216_v60 = vld [vmem:[%s2526_s20 + $0x88] sm:$0xff] }
  0x26   : > { %295 = vperm.xlu1 %2356, %v253_v18   ;;  %v2103_v57 = vld [vmem:[%s3364_s3 + $0x98] sm:$0xff]  ;;  %v2102_v58 = vld [vmem:[%s3364_s3 + $0x90] sm:$0xff]  ;;  %v2101_v61 = vld [vmem:[%s3364_s3 + $0x88] sm:$0xff] }
  0x27   : > { %v201_v59 = vld [vmem:[%s2526_s20 + $0x10] sm:$0xff]  ;;  %v2100_v62 = vld [vmem:[%s3364_s3 + $0x80] sm:$0xff]  ;;  %v200_v63 = vld [vmem:[%s2526_s20 + $0x8] sm:$0xff] }
  0x28   : > { %2227 = vmatpush3.xpose.msk.msra.mxu0 %vm343_vm0, %v210_v23  ;;  %v215_v1 = vld [vmem:[%s2526_s20 + $0x80] sm:$0xff]  ;;  %v2147_v2 = vld [vmem:[%s3364_s3 + $0x178] sm:$0xff]  ;;  %v2146_v3 = vld [vmem:[%s3364_s3 + $0x170] sm:$0xff] }
  0x29   : > { %290 = vperm.xlu0 %2355, %v252_v21   ;;  %2228 = vmatprep.subr.msk.mxu0 %vm343_vm0, %v225_v24  ;;  %v199_v4 = vld [vmem:[%s2526_s20] sm:$0xff]  ;;  %v2145_v5 = vld [vmem:[%s3364_s3 + $0x168] sm:$0xff]  ;;  %v2143_v8 = vld [vmem:[%s3364_s3 + $0x158] sm:$0xff]  ;;  %s2429_s20 = smov [#allocation2]  }
  0x2a   : > { %285 = vperm.xlu1 %2356, %v251_v22   ;;  %v2144_v6 = vld [vmem:[%s3364_s3 + $0x160] sm:$0xff]  ;;  %v232_v7 = vld [vmem:[%s3362_s1 + $0x8] sm:$0xff]  ;;  %v2142_v9 = vld [vmem:[%s3364_s3 + $0x150] sm:$0xff]  ;;  %s2369_s29 = sshll.u32 %s2429_s20, 4  ;;  %s2370_s29 = int_to_ptr.vmem [resolvable:$false] %s2369_s29 }
  0x2b   : > { %v233_v10 = vld [vmem:[%s3362_s1 + $0x10] sm:$0xff]  ;;  %v2141_v11 = vld [vmem:[%s3364_s3 + $0x148] sm:$0xff]  ;;  %v234_v12 = vld [vmem:[%s3362_s1 + $0x18] sm:$0xff]  ;;  %s2371_s30 = scalar_lea.vmem %s2370_s29, 512  ;;  %p2372_p0 = scmp.lt.s32.totalorder %s3322_s14, %s2370_s29 }
  0x2c   : > { %2229 = vmatpush3.xpose.msk.msra.mxu0 %vm343_vm0, %v209_v27  ;;  %v2139_v13 = vld [vmem:[%s3364_s3 + $0x138] sm:$0xff]  ;;  %v2138_v14 = vld [vmem:[%s3364_s3 + $0x130] sm:$0xff]  ;;  %v235_v15 = vld [vmem:[%s3362_s1 + $0x20] sm:$0xff]  ;;  %p2373_p1 = scmp.lt.s32.totalorder %s2371_s30, %s2365_s28 }
  0x2d   : > { %280 = vperm.xlu0 %2355, %v250_v25   ;;  %2230 = vmatprep.subr.msk.mxu0 %vm343_vm0, %v224_v28  ;;  %v2137_v16 = vld [vmem:[%s3364_s3 + $0x128] sm:$0xff]  ;;  %v2136_v17 = vld [vmem:[%s3364_s3 + $0x120] sm:$0xff]  ;;  %v2135_v19 = vld [vmem:[%s3364_s3 + $0x118] sm:$0xff] }
  0x2e   : > { %275 = vperm.xlu1 %2356, %v249_v26   ;;  %v236_v18 = vld [vmem:[%s3362_s1 + $0x28] sm:$0xff]  ;;  %v2134_v20 = vld [vmem:[%s3364_s3 + $0x110] sm:$0xff]  ;;  %v2132_v23 = vld [vmem:[%s3364_s3 + $0x100] sm:$0xff]  ;;  %p2374_p2 = por %p2373_p1, %p2372_p0 }
  0x2f   : > { %v237_v21 = vld [vmem:[%s3362_s1 + $0x30] sm:$0xff]  ;;  %v2133_v22 = vld [vmem:[%s3364_s3 + $0x108] sm:$0xff]  ;;  %v238_v24 = vld [vmem:[%s3362_s1 + $0x38] sm:$0xff] }
  0x30   : > { %2231 = vmatpush3.xpose.msk.msra.mxu0 %vm343_vm0, %v208_v31  ;;  %v2179_v25 = vld [vmem:[%s3364_s3 + $0x1f8] sm:$0xff]  ;;  %v2178_v26 = vld [vmem:[%s3364_s3 + $0x1f0] sm:$0xff]  ;;  %v239_v27 = vld [vmem:[%s3362_s1 + $0x40] sm:$0xff]  ;;  %p2375_p3 = pnand %p2374_p2, %p2368_p13 }
  0x31   : > { %270 = vperm.xlu0 %2355, %v248_v29   ;;  %2232 = vmatprep.subr.msk.mxu0 %vm343_vm0, %v223_v32  ;;  %v2177_v28 = vld [vmem:[%s3364_s3 + $0x1e8] sm:$0xff]  ;;  %v2176_v29 = vld [vmem:[%s3364_s3 + $0x1e0] sm:$0xff]  ;;  %v2175_v31 = vld [vmem:[%s3364_s3 + $0x1d8] sm:$0xff] }
  0x32   : > { %265 = vperm.xlu1 %2356, %v247_v30   ;;  %v240_v30 = vld [vmem:[%s3362_s1 + $0x48] sm:$0xff]  ;;  %v2174_v32 = vld [vmem:[%s3364_s3 + $0x1d0] sm:$0xff] }
  0x34   : > { %2233 = vmatpush3.xpose.msk.msra.mxu0 %vm343_vm0, %v207_v35  ;;  %v2172_v35 = vld [vmem:[%s3364_s3 + $0x1c0] sm:$0xff] }
  0x35   : > { %823 = vperm.xlu0 %2355, %v2115_v33   ;;  %2234 = vmatprep.subr.msk.mxu0 %vm343_vm0, %v222_v36  ;;  %v241_v33 = vld [vmem:[%s3362_s1 + $0x50] sm:$0xff]  ;;  %v242_v36 = vld [vmem:[%s3362_s1 + $0x58] sm:$0xff] }
  0x36   : > { %818 = vperm.xlu1 %2356, %v2114_v34   ;;  %v2173_v34 = vld [vmem:[%s3364_s3 + $0x1c8] sm:$0xff] }
  0x38   : > { %2235 = vmatpush3.xpose.msk.msra.mxu0 %vm343_vm0, %v206_v39  ;;  %v243_v39 = vld [vmem:[%s3362_s1 + $0x60] sm:$0xff] }
  0x39   : > { %813 = vperm.xlu0 %2355, %v2113_v37   ;;  %2236 = vmatprep.subr.msk.mxu0 %vm343_vm0, %v221_v40  ;;  %v2171_v37 = vld [vmem:[%s3364_s3 + $0x1b8] sm:$0xff]  ;;  %v2169_v40 = vld [vmem:[%s3364_s3 + $0x1a8] sm:$0xff] }
  0x3a   : > { %808 = vperm.xlu1 %2356, %v2112_v38   ;;  %v2170_v38 = vld [vmem:[%s3364_s3 + $0x1b0] sm:$0xff] }
  0x3c   : > { %2237 = vmatpush3.xpose.msk.msra.mxu0 %vm343_vm0, %v205_v43  ;;  %v2167_v43 = vld [vmem:[%s3364_s3 + $0x198] sm:$0xff] }
  0x3d   : > { %803 = vperm.xlu0 %2355, %v2111_v41   ;;  %2238 = vmatprep.subr.msk.mxu0 %vm343_vm0, %v220_v44  ;;  %v2168_v41 = vld [vmem:[%s3364_s3 + $0x1a0] sm:$0xff]  ;;  %v2166_v44 = vld [vmem:[%s3364_s3 + $0x190] sm:$0xff] }
  0x3e   : > { %798 = vperm.xlu1 %2356, %v2110_v42   ;;  %v244_v42 = vld [vmem:[%s3362_s1 + $0x68] sm:$0xff] }
  0x40   : > { %2239 = vmatpush3.xpose.msk.msra.mxu0 %vm343_vm0, %v204_v47  ;;  %v2164_v47 = vld [vmem:[%s3364_s3 + $0x180] sm:$0xff] }
  0x41   : > { %793 = vperm.xlu0 %2355, %v2109_v45   ;;  %2240 = vmatprep.subr.msk.mxu0 %vm343_vm0, %v219_v48  ;;  %v245_v45 = vld [vmem:[%s3362_s1 + $0x70] sm:$0xff]  ;;  %v246_v48 = vld [vmem:[%s3362_s1 + $0x78] sm:$0xff] }
  0x42   : > { %788 = vperm.xlu1 %2356, %v2108_v46   ;;  %v2165_v46 = vld [vmem:[%s3364_s3 + $0x188] sm:$0xff] }
  0x44   : > { %2241 = vmatpush3.xpose.msk.msra.mxu0 %vm343_vm0, %v203_v51 }
  0x45   : > { %783 = vperm.xlu0 %2355, %v2107_v49   ;;  %2242 = vmatprep.subr.msk.mxu0 %vm343_vm0, %v218_v52  ;;  %v2196_v49 = vld [vmem:[%s3364_s3 + $0x200] sm:$0xff] }
  0x46   : > { %778 = vperm.xlu1 %2356, %v2106_v50   ;;  %v2428_v50 = vmov 0.0  }
  0x47   : > { %890 = vmatprep.mubr.f32.mxu1 %v2428_v50 }
  0x48   : > { %2243 = vmatpush3.xpose.msk.msra.mxu0 %vm343_vm0, %v202_v55 }
  0x49   : > { %773 = vperm.xlu0 %2355, %v2105_v53   ;;  %2244 = vmatprep.subr.msk.mxu0 %vm343_vm0, %v217_v56 }
  0x4a   : > { %768 = vperm.xlu1 %2356, %v2104_v54  }
  0x4c   : > { %2245 = vmatpush3.xpose.msk.msra.mxu0 %vm343_vm0, %v201_v59 }
  0x4d   : > { %763 = vperm.xlu0 %2355, %v2103_v57   ;;  %2246 = vmatprep.subr.msk.mxu0 %vm343_vm0, %v216_v60 }
  0x4e   : > { %758 = vperm.xlu1 %2356, %v2102_v58  }
  0x50   : > { %2247 = vmatpush3.xpose.msk.msra.mxu0 %vm343_vm0, %v200_v63 }
  0x51   : > { %753 = vperm.xlu0 %2355, %v2101_v61   ;;  %2248 = vmatprep.subr.msk.mxu0 %vm343_vm0, %v215_v1 }
  0x52   : > { %748 = vperm.xlu1 %2356, %v2100_v62  }
  0x54   : > { %2249 = vmatpush3.xpose.msk.msra.mxu0 %vm343_vm0, %v199_v4 }
  0x55   : > { %1162 = vperm.xlu0 %2355, %v2147_v2  }
  0x56   : > { %1157 = vperm.xlu1 %2356, %v2146_v3  }
  0x57   : > { %2251 = vmatmul.mubr.msk.f32.vlgmr.msra.gmra.mxu0 %vm343_vm0, %v2507_v0  ;;  %v2140_v0 = vld [vmem:[%s3364_s3 + $0x140] sm:$0xff] }
  0x58   : > { %2252 = vmatprep.mubr.msk.f32.mxu0 %vm343_vm0, %v232_v7 }
  0x59   : > { %1152 = vperm.xlu0 %2355, %v2145_v5  }
  0x5a   : > { %1147 = vperm.xlu1 %2356, %v2144_v6  }
  0x5b   : > { %2253 = vmatmul.mubr.msk.f32.gmra.mxu0 %vm343_vm0, %v232_v7 }
  0x5c   : > { %2254 = vmatprep.mubr.msk.f32.mxu0 %vm343_vm0, %v233_v10 }
  0x5d   : > { %1142 = vperm.xlu0 %2355, %v2143_v8  }
  0x5e   : > { %1137 = vperm.xlu1 %2356, %v2142_v9  }
  0x5f   : > { %2255 = vmatmul.mubr.msk.f32.gmra.mxu0 %vm343_vm0, %v233_v10 }
  0x60   : > { %2256 = vmatprep.mubr.msk.f32.mxu0 %vm343_vm0, %v234_v12 }
  0x61   : > { %1132 = vperm.xlu0 %2355, %v2141_v11  }
  0x62   : > { %1127 = vperm.xlu1 %2356, %v2140_v0  }
  0x63   : > { %2257 = vmatmul.mubr.msk.f32.gmra.mxu0 %vm343_vm0, %v234_v12 }
  0x64   : > { %2258 = vmatprep.mubr.msk.f32.mxu0 %vm343_vm0, %v235_v15 }
  0x65   : > { %1122 = vperm.xlu0 %2355, %v2139_v13  }
  0x66   : > { %1117 = vperm.xlu1 %2356, %v2138_v14  }
  0x67   : > { %2259 = vmatmul.mubr.msk.f32.gmra.mxu0 %vm343_vm0, %v235_v15 }
  0x68   : > { %2260 = vmatprep.mubr.msk.f32.mxu0 %vm343_vm0, %v236_v18 }
  0x69   : > { %1112 = vperm.xlu0 %2355, %v2137_v16  }
  0x6a   : > { %1107 = vperm.xlu1 %2356, %v2136_v17  }
  0x6b   : > { %2261 = vmatmul.mubr.msk.f32.gmra.mxu0 %vm343_vm0, %v236_v18 }
  0x6c   : > { %2262 = vmatprep.mubr.msk.f32.mxu0 %vm343_vm0, %v237_v21 }
  0x6d   : > { %1102 = vperm.xlu0 %2355, %v2135_v19  }
  0x6e   : > { %1097 = vperm.xlu1 %2356, %v2134_v20  }
  0x6f   : > { %2263 = vmatmul.mubr.msk.f32.gmra.mxu0 %vm343_vm0, %v237_v21 }
  0x70   : > { %2264 = vmatprep.mubr.msk.f32.mxu0 %vm343_vm0, %v238_v24 }
  0x71   : > { %1092 = vperm.xlu0 %2355, %v2133_v22  }
  0x72   : > { %1087 = vperm.xlu1 %2356, %v2132_v23  }
  0x73   : > { %2265 = vmatmul.mubr.msk.f32.gmra.mxu0 %vm343_vm0, %v238_v24 }
  0x74   : > { %2266 = vmatprep.mubr.msk.f32.mxu0 %vm343_vm0, %v239_v27 }
  0x75   : > { %1501 = vperm.xlu0 %2355, %v2179_v25  }
  0x76   : > { %1496 = vperm.xlu1 %2356, %v2178_v26  }
  0x77   : > { %2267 = vmatmul.mubr.msk.f32.gmra.mxu0 %vm343_vm0, %v239_v27 }
  0x78   : > { %2268 = vmatprep.mubr.msk.f32.mxu0 %vm343_vm0, %v240_v30 }
  0x79   : > { %1491 = vperm.xlu0 %2355, %v2177_v28  }
  0x7a   : > { %1486 = vperm.xlu1 %2356, %v2176_v29  }
  0x7b   : > { %2269 = vmatmul.mubr.msk.f32.gmra.mxu0 %vm343_vm0, %v240_v30 }
  0x7c   : > { %2270 = vmatprep.mubr.msk.f32.mxu0 %vm343_vm0, %v241_v33 }
  0x7d   : > { %1481 = vperm.xlu0 %2355, %v2175_v31  }
  0x7e   : > { %1476 = vperm.xlu1 %2356, %v2174_v32  }
  0x7f   : > { %2271 = vmatmul.mubr.msk.f32.gmra.mxu0 %vm343_vm0, %v241_v33 }
  0x80   : > { %2272 = vmatprep.mubr.msk.f32.mxu0 %vm343_vm0, %v242_v36 }
  0x81   : > { %1471 = vperm.xlu0 %2355, %v2173_v34  }
  0x82   : > { %1466 = vperm.xlu1 %2356, %v2172_v35  }
  0x83   : > { %2273 = vmatmul.mubr.msk.f32.gmra.mxu0 %vm343_vm0, %v242_v36 }
  0x84   : > { %2274 = vmatprep.mubr.msk.f32.mxu0 %vm343_vm0, %v243_v39 }
  0x85   : > { %1461 = vperm.xlu0 %2355, %v2171_v37  }
  0x86   : > { %1456 = vperm.xlu1 %2356, %v2170_v38  }
  0x87   : > { %2275 = vmatmul.mubr.msk.f32.gmra.mxu0 %vm343_vm0, %v243_v39 }
  0x88   : > { %2276 = vmatprep.mubr.msk.f32.mxu0 %vm343_vm0, %v244_v42 }
  0x89   : > { %1451 = vperm.xlu0 %2355, %v2169_v40  }
  0x8a   : > { %1446 = vperm.xlu1 %2356, %v2168_v41  }
  0x8b   : > { %2277 = vmatmul.mubr.msk.f32.gmra.mxu0 %vm343_vm0, %v244_v42 }
  0x8c   : > { %2278 = vmatprep.mubr.msk.f32.mxu0 %vm343_vm0, %v245_v45 }
  0x8d   : > { %1441 = vperm.xlu0 %2355, %v2167_v43  }
  0x8e   : > { %1436 = vperm.xlu1 %2356, %v2166_v44  }
  0x8f   : > { %2279 = vmatmul.mubr.msk.f32.gmra.mxu0 %vm343_vm0, %v245_v45 }
  0x90   : > { %2280 = vmatprep.mubr.msk.f32.mxu0 %vm343_vm0, %v246_v48  ;;  %v341_v10 = vpop.permute.xlu0 %340 }
  0x91   : > { %1431 = vperm.xlu0 %2355, %v2165_v46   ;;  %v331_v0 = vpop.permute.xlu1 %330 }
  0x92   : > { %1426 = vperm.xlu1 %2356, %v2164_v47  }
  0x93   : > { %2281 = vmatmul.mubr.msk.f32.gmra.mxu0 %vm343_vm0, %v246_v48 }
  0x94   : > { %1568 = vmatprep.mubr.f32.mxu0 %v2428_v50  ;;  %v336_v14 = vpop.permute.xlu0 %335 }
  0x95   : > { %1765 = vperm.xlu0 %2355, %v2196_v49   ;;  %v326_v16 = vpop.permute.xlu1 %325 }
  0x98   : > { %v321_v19 = vpop.permute.xlu0 %320 }
  0x99   : > { %v316_v21 = vpop.permute.xlu1 %315 }
  0x9c   : > { %v311_v26 = vpop.permute.xlu0 %310 }
  0x9d   : > { %v306_v31 = vpop.permute.xlu1 %305 }
  0xa0   : > { %v301_v42 = vpop.permute.xlu0 %300 }
  0xa1   : > { %v296_v49 = vpop.permute.xlu1 %295 }
 0x117   : > { %v2854_v51 = vpop.f32.mrf.mxu0 }
 0x119   : > { %v2856_v52 = vpop.f32.mrf.mxu0 }
 0x11b   : > { %v2858_v53 = vpop.f32.mrf.mxu0 }
 0x11d   : > { %v2860_v54 = vpop.f32.mrf.mxu0 }
 0x11f   : > { %v2862_v55 = vpop.f32.mrf.mxu0 }
 0x121   : > { %v2864_v56 = vpop.f32.mrf.mxu0 }
 0x123   : > { %v2866_v57 = vpop.f32.mrf.mxu0 }
 0x125   : > { %v2868_v58 = vpop.f32.mrf.mxu0 }
 0x127   : > { %v2870_v59 = vpop.f32.mrf.mxu0 }
 0x129   : > { %v2872_v60 = vpop.f32.mrf.mxu0 }
 0x12b   : > { %v2874_v61 = vpop.f32.mrf.mxu0 }
 0x12d   : > { %v2876_v62 = vpop.f32.mrf.mxu0 }
 0x12f   : > { %v2878_v63 = vpop.f32.mrf.mxu0 }
 0x131   : > { %v2880_v1 = vpop.f32.mrf.mxu0 }
 0x133   : > { %v2882_v2 = vpop.f32.mrf.mxu0 }
 0x135   : > { %v2884_v3 = vpop.f32.mrf.mxu0 }
 0x137   : > { %v2886_v4 = vpop.f32.mrf.mxu0 }
 0x139   : > { %v604_v5 = vpop.f32.mrf.mxu0 }
 0x13b   : > { %v608_v6 = vpop.f32.mrf.mxu0 }
 0x13d   : > { %v610_v7 = vpop.f32.mrf.mxu0 }
 0x13f   : > { %v614_v8 = vpop.f32.mrf.mxu0 }
 0x141   : > { %v616_v9 = vpop.f32.mrf.mxu0 }
 0x142   : > { %v617_v46 = vadd.f32 %v616_v9, %v316_v21  ;;  %v291_v9 = vpop.permute.xlu0 %290 }
 0x143   : > { %v620_v11 = vpop.f32.mrf.mxu0 }
 0x144   : > { %v621_v43 = vadd.f32 %v620_v11, %v321_v19  ;;  %v605_v11 = vadd.f32 %v604_v5, %v306_v31  ;;  %v593_v5 = vadd.f32 %v2880_v1, %v296_v49 }
 0x145   : > { %v622_v12 = vpop.f32.mrf.mxu0 }
 0x146   : > { %v623_v39 = vadd.f32 %v622_v12, %v321_v19  ;;  %v609_v12 = vadd.f32 %v608_v6, %v311_v26  ;;  %v670_v19 = vmul.f32 0.4, %v617_v46  ;;  %v597_v6 = vadd.f32 %v2882_v2, %v301_v42 }
 0x147   : > { %v626_v13 = vpop.f32.mrf.mxu0  ;;  %v585_v2 = vadd.f32 %v2874_v61, %v291_v9 }
 0x148   : > { %v627_v37 = vadd.f32 %v626_v13, %v326_v16 }
 0x149   : > { %v628_v15 = vpop.f32.mrf.mxu0 }
 0x14a   : > { %v629_v34 = vadd.f32 %v628_v15, %v326_v16  ;;  %v611_v15 = vadd.f32 %v610_v7, %v311_v26  ;;  %v671_v16 = vmul.f32 0.4, %v621_v43  ;;  %v667_v26 = vmul.f32 0.4, %v609_v12 }
 0x14b   : > { %v632_v17 = vpop.f32.mrf.mxu0 }
 0x14c   : > { %v633_v32 = vadd.f32 %v632_v17, %v331_v0  ;;  %v674_v47 = vmul.f32 0.4, %v629_v34  ;;  %v672_v17 = vmul.f32 0.4, %v623_v39  ;;  %v668_v7 = vmul.f32 0.4, %v611_v15 }
 0x14d   : > { %v634_v18 = vpop.f32.mrf.mxu0 }
 0x14e   : > { %v635_v29 = vadd.f32 %v634_v18, %v331_v0  ;;  %v675_v44 = vmul.f32 0.4, %v633_v32  ;;  %v673_v0 = vmul.f32 0.4, %v627_v37 }
 0x14f   : > { %v638_v20 = vpop.f32.mrf.mxu0 }
 0x150   : > { %v639_v27 = vadd.f32 %v638_v20, %v336_v14  ;;  %v676_v40 = vmul.f32 0.4, %v635_v29  ;;  %v707_v18 = vmax.f32 %v633_v32, %v675_v44  ;;  %v706_v20 = vmax.f32 %v629_v34, %v674_v47  ;;  %v281_v34 = vpop.permute.xlu0 %280 }
 0x151   : > { %v640_v22 = vpop.f32.mrf.mxu0  ;;  %v573_v61 = vadd.f32 %v2866_v57, %v281_v34  ;;  %v659_v44 = vmul.f32 0.4, %v585_v2 }
 0x152   : > { %v641_v24 = vadd.f32 %v640_v22, %v336_v14  ;;  %v677_v38 = vmul.f32 0.4, %v639_v27  ;;  %v708_v13 = vmax.f32 %v635_v29, %v676_v40  ;;  %v603_v22 = vadd.f32 %v2886_v4, %v306_v31 }
 0x153   : > { %v644_v23 = vpop.f32.mrf.mxu0  ;;  %v702_v29 = vmax.f32 %v617_v46, %v670_v19  ;;  %v591_v4 = vadd.f32 %v2878_v63, %v296_v49 }
 0x154   : > { %v645_v25 = vadd.f32 %v644_v23, %v341_v10  ;;  %v678_v35 = vmul.f32 0.4, %v641_v24  ;;  %v709_v14 = vmax.f32 %v639_v27, %v677_v38  ;;  %v703_v27 = vmax.f32 %v621_v43, %v671_v16 }
 0x155   : > { %v646_v28 = vpop.f32.mrf.mxu0  ;;  %v661_v40 = vmul.f32 0.4, %v591_v4 }
 0x156   : > { %v647_v30 = vadd.f32 %v646_v28, %v341_v10  ;;  %v679_v33 = vmul.f32 0.4, %v645_v25  ;;  %v710_v48 = vmax.f32 %v641_v24, %v678_v35  ;;  %v615_v10 = vadd.f32 %v614_v8, %v316_v21 }
 0x157   : > { %v705_v8 = vmax.f32 %v627_v37, %v673_v0  ;;  %v599_v21 = vadd.f32 %v2884_v3, %v301_v42  ;;  %v704_v24 = vmax.f32 %v623_v39, %v672_v17  ;;  %v666_v28 = vmul.f32 0.4, %v605_v11 }
 0x158   : > { %v680_v36 = vmul.f32 0.4, %v647_v30  ;;  %v711_v45 = vmax.f32 %v645_v25, %v679_v33  ;;  %v669_v23 = vmul.f32 0.4, %v615_v10  ;;  %v286_v25 = vpop.permute.xlu1 %285  ;;  %v587_v3 = vadd.f32 %v2876_v62, %v291_v9 }
 0x159   : > { %v664_v32 = vmul.f32 0.4, %v599_v21  ;;  %v700_v33 = vmax.f32 %v611_v15, %v668_v7  ;;  %v663_v35 = vmul.f32 0.4, %v597_v6  ;;  %v581_v1 = vadd.f32 %v2872_v60, %v286_v25 }
 0x15a   : > { %v712_v41 = vmax.f32 %v647_v30, %v680_v36  ;;  %v665_v30 = vmul.f32 0.4, %v603_v22  ;;  %v701_v31 = vmax.f32 %v615_v10, %v669_v23  ;;  %v699_v36 = vmax.f32 %v609_v12, %v667_v26  ;;  %v716_v26 = vld [vmem:[%s3363_s2 + $0x18] sm:$0xff] }
 0x15b   : > { %v662_v37 = vmul.f32 0.4, %v593_v5  ;;  %v698_v38 = vmax.f32 %v605_v11, %v666_v28  ;;  %v579_v39 = vadd.f32 %v2870_v59, %v286_v25  ;;  %v575_v62 = vadd.f32 %v2868_v58, %v281_v34  ;;  %v714_v25 = vld [vmem:[%s3363_s2 + $0x8] sm:$0xff]  ;;  %v719_v28 = vld [vmem:[%s3363_s2 + $0x30] sm:$0xff] }
 0x15c   : > { %826 = vmatprep.subr.mxu1 %v712_v41  ;;  %v276_v63 = vpop.permute.xlu1 %275  ;;  %v697_v41 = vmax.f32 %v603_v22, %v665_v30  ;;  %v660_v42 = vmul.f32 0.4, %v587_v3  ;;  %v696_v43 = vmax.f32 %v599_v21, %v664_v32  ;;  %v658_v46 = vmul.f32 0.4, %v581_v1  ;;  %v722_v30 = vld [vmem:[%s3363_s2 + $0x48] sm:$0xff]  ;;  %v725_v32 = vld [vmem:[%s3363_s2 + $0x60] sm:$0xff] }
 0x15d   : > { %827 = vmatpush1.msra.mxu1 %v711_v45  ;;  %v695_v45 = vmax.f32 %v597_v6, %v663_v35  ;;  %v569_v60 = vadd.f32 %v2864_v56, %v276_v63  ;;  %v694_v47 = vmax.f32 %v593_v5, %v662_v37  ;;  %v567_v59 = vadd.f32 %v2862_v55, %v276_v63  ;;  %v715_v6 = vld [vmem:[%s3363_s2 + $0x10] sm:$0xff]  ;;  %v718_v5 = vld [vmem:[%s3363_s2 + $0x28] sm:$0xff] }
 0x15e   : > { %828 = vmatprep.subr.mxu1 %v710_v48  ;;  %v271_v48 = vpop.permute.xlu0 %270  ;;  %v657_v49 = vmul.f32 0.4, %v579_v39  ;;  %v693_v10 = vmax.f32 %v591_v4, %v661_v40  ;;  %v656_v0 = vmul.f32 0.4, %v575_v62  ;;  %v655_v17 = vmul.f32 0.4, %v573_v61 }
 0x15f   : > { %829 = vmatpush1.msra.mxu1 %v709_v14  ;;  %v563_v58 = vadd.f32 %v2860_v54, %v271_v48  ;;  %v692_v14 = vmax.f32 %v587_v3, %v660_v42  ;;  %v561_v15 = vadd.f32 %v2858_v53, %v271_v48  ;;  %v654_v12 = vmul.f32 0.4, %v569_v60  ;;  %v721_v4 = vld [vmem:[%s3363_s2 + $0x40] sm:$0xff]  ;;  %v724_v3 = vld [vmem:[%s3363_s2 + $0x58] sm:$0xff]  ;;  %v727_v34 = vld [vmem:[%s3363_s2 + $0x70] sm:$0xff] }
 0x160   : > { %830 = vmatprep.subr.mxu1 %v708_v13  ;;  %v266_v57 = vpop.permute.xlu1 %265  ;;  %v691_v13 = vmax.f32 %v585_v2, %v659_v44  ;;  %v690_v16 = vmax.f32 %v581_v1, %v658_v46  ;;  %v689_v11 = vmax.f32 %v579_v39, %v657_v49  ;;  %v688_v19 = vmax.f32 %v575_v62, %v656_v0  ;;  %v728_v2 = vld [vmem:[%s3363_s2 + $0x78] sm:$0xff] }
 0x161   : > { %831 = vmatpush1.msra.mxu1 %v707_v18  ;;  %v557_v56 = vadd.f32 %v2856_v52, %v266_v57  ;;  %v555_v55 = vadd.f32 %v2854_v51, %v266_v57  ;;  %v653_v18 = vmul.f32 0.4, %v567_v59  ;;  %v652_v54 = vmul.f32 0.4, %v563_v58 }
 0x162   : > { %832 = vmatprep.subr.mxu1 %v706_v20  ;;  %v651_v20 = vmul.f32 0.4, %v561_v15  ;;  %v687_v9 = vmax.f32 %v573_v61, %v655_v17  ;;  %v686_v22 = vmax.f32 %v569_v60, %v654_v12 }
 0x163   : > { %833 = vmatpush1.msra.mxu1 %v705_v8  ;;  %v650_v53 = vmul.f32 0.4, %v557_v56  ;;  %v649_v23 = vmul.f32 0.4, %v555_v55  ;;  %v685_v8 = vmax.f32 %v567_v59, %v653_v18  ;;  %v684_v52 = vmax.f32 %v563_v58, %v652_v54  ;;  %v824_v58 = vpop.permute.xlu0 %823 }
 0x164   : > { %834 = vmatprep.subr.mxu1 %v704_v24  ;;  %v683_v21 = vmax.f32 %v561_v15, %v651_v20  ;;  %v713_v24 = vld [vmem:[%s3363_s2] sm:$0xff] }
 0x165   : > { %835 = vmatpush1.msra.mxu1 %v703_v27  ;;  %v682_v51 = vmax.f32 %v557_v56, %v650_v53  ;;  %v681_v7 = vmax.f32 %v555_v55, %v649_v23  ;;  %v717_v27 = vld [vmem:[%s3363_s2 + $0x20] sm:$0xff] }
 0x166   : > { %836 = vmatprep.subr.mxu1 %v702_v29  ;;  %v720_v29 = vld [vmem:[%s3363_s2 + $0x38] sm:$0xff] }
 0x167   : > { %837 = vmatpush1.msra.mxu1 %v701_v31  ;;  %v723_v31 = vld [vmem:[%s3363_s2 + $0x50] sm:$0xff]  ;;  %v814_v17 = vpop.permute.xlu0 %813 }
 0x168   : > { %838 = vmatprep.subr.mxu1 %v700_v33  ;;  %v726_v33 = vld [vmem:[%s3363_s2 + $0x68] sm:$0xff] }
 0x169   : > { %839 = vmatpush1.msra.mxu1 %v699_v36 }
 0x16a   : > { %840 = vmatprep.subr.mxu1 %v698_v38 }
 0x16b   : > { %841 = vmatpush1.msra.mxu1 %v697_v41  ;;  %v804_v55 = vpop.permute.xlu0 %803 }
 0x16c   : > { %842 = vmatprep.subr.mxu1 %v696_v43 }
 0x16d   : > { %843 = vmatpush1.msra.mxu1 %v695_v45 }
 0x16e   : > { %844 = vmatprep.subr.mxu1 %v694_v47 }
 0x16f   : > { %845 = vmatpush1.msra.mxu1 %v693_v10  ;;  %v794_v53 = vpop.permute.xlu0 %793 }
 0x170   : > { %846 = vmatprep.subr.mxu1 %v692_v14  ;;  %v819_v14 = vpop.permute.xlu1 %818 }
 0x171   : > { %847 = vmatpush1.msra.mxu1 %v691_v13 }
 0x172   : > { %848 = vmatprep.subr.mxu1 %v690_v16 }
 0x173   : > { %849 = vmatpush1.msra.mxu1 %v689_v11 }
 0x174   : > { %850 = vmatprep.subr.mxu1 %v688_v19  ;;  %v809_v56 = vpop.permute.xlu1 %808 }
 0x175   : > { %851 = vmatpush1.msra.mxu1 %v687_v9 }
 0x176   : > { %852 = vmatprep.subr.mxu1 %v686_v22 }
 0x177   : > { %853 = vmatpush1.msra.mxu1 %v685_v8 }
 0x178   : > { %854 = vmatprep.subr.mxu1 %v684_v52  ;;  %v799_v11 = vpop.permute.xlu1 %798 }
 0x179   : > { %855 = vmatpush1.msra.mxu1 %v683_v21 }
 0x17a   : > { %856 = vmatprep.subr.mxu1 %v682_v51 }
 0x17b   : > { %857 = vmatpush1.msra.mxu1 %v681_v7 }
 0x17c   : > { %891 = vmatmul.mubr.f32.vlgmr.msra.gmra.mxu1 %v713_v24  ;;  %v789_v21 = vpop.permute.xlu1 %788 }
 0x17d   : > { %896 = vmatprep.mubr.f32.mxu1 %v2428_v50 }
 0x180   : > { %897 = vmatmul.mubr.f32.gmra.mxu1 %v714_v25 }
 0x181   : > { %902 = vmatprep.mubr.f32.mxu1 %v2428_v50 }
 0x184   : > { %903 = vmatmul.mubr.f32.gmra.mxu1 %v715_v6 }
 0x185   : > { %908 = vmatprep.mubr.f32.mxu1 %v2428_v50 }
 0x188   : > { %909 = vmatmul.mubr.f32.gmra.mxu1 %v716_v26 }
 0x189   : > { %914 = vmatprep.mubr.f32.mxu1 %v2428_v50 }
 0x18c   : > { %915 = vmatmul.mubr.f32.gmra.mxu1 %v717_v27 }
 0x18d   : > { %920 = vmatprep.mubr.f32.mxu1 %v2428_v50 }
 0x190   : > { %921 = vmatmul.mubr.f32.gmra.mxu1 %v718_v5 }
 0x191   : > { %926 = vmatprep.mubr.f32.mxu1 %v2428_v50 }
 0x194   : > { %927 = vmatmul.mubr.f32.gmra.mxu1 %v719_v28 }
 0x195   : > { %932 = vmatprep.mubr.f32.mxu1 %v2428_v50 }
 0x198   : > { %933 = vmatmul.mubr.f32.gmra.mxu1 %v720_v29 }
 0x199   : > { %938 = vmatprep.mubr.f32.mxu1 %v2428_v50 }
 0x19c   : > { %939 = vmatmul.mubr.f32.gmra.mxu1 %v721_v4  ;;  %v784_v4 = vpop.permute.xlu0 %783 }
 0x19d   : > { %944 = vmatprep.mubr.f32.mxu1 %v2428_v50 }
 0x1a0   : > { %945 = vmatmul.mubr.f32.gmra.mxu1 %v722_v30 }
 0x1a1   : > { %950 = vmatprep.mubr.f32.mxu1 %v2428_v50 }
 0x1a4   : > { %951 = vmatmul.mubr.f32.gmra.mxu1 %v723_v31 }
 0x1a5   : > { %956 = vmatprep.mubr.f32.mxu1 %v2428_v50 }
 0x1a8   : > { %957 = vmatmul.mubr.f32.gmra.mxu1 %v724_v3 }
 0x1a9   : > { %962 = vmatprep.mubr.f32.mxu1 %v2428_v50 }
 0x1ac   : > { %963 = vmatmul.mubr.f32.gmra.mxu1 %v725_v32 }
 0x1ad   : > { %968 = vmatprep.mubr.f32.mxu1 %v2428_v50 }
 0x1b0   : > { %969 = vmatmul.mubr.f32.gmra.mxu1 %v726_v33 }
 0x1b1   : > { %974 = vmatprep.mubr.f32.mxu1 %v2428_v50 }
 0x1b4   : > { %975 = vmatmul.mubr.f32.gmra.mxu1 %v727_v34 }
 0x1b5   : > { %980 = vmatprep.mubr.f32.mxu1 %v2428_v50 }
 0x1b8   : > { %981 = vmatmul.mubr.f32.gmra.mxu1 %v728_v2  ;;  %v779_v2 = vpop.permute.xlu1 %778 }
 0x1b9   : > { %1229 = vmatprep.mubr.f32.mxu1 %v2428_v50 }
 0x23c   : > { %v2969_v35 = vpop.f32.mrf.mxu1 }
 0x23e   : > { %v2971_v36 = vpop.f32.mrf.mxu1 }
 0x240   : > { %v2973_v1 = vpop.f32.mrf.mxu1 }
 0x242   : > { %v2975_v37 = vpop.f32.mrf.mxu1 }
 0x244   : > { %v2977_v38 = vpop.f32.mrf.mxu1 }
 0x246   : > { %v2979_v63 = vpop.f32.mrf.mxu1 }
 0x248   : > { %v2981_v39 = vpop.f32.mrf.mxu1 }
 0x24a   : > { %v2983_v40 = vpop.f32.mrf.mxu1 }
 0x24c   : > { %v2985_v41 = vpop.f32.mrf.mxu1 }
 0x24e   : > { %v2987_v62 = vpop.f32.mrf.mxu1 }
 0x250   : > { %v2989_v42 = vpop.f32.mrf.mxu1 }
 0x252   : > { %v2991_v43 = vpop.f32.mrf.mxu1 }
 0x254   : > { %v2993_v61 = vpop.f32.mrf.mxu1 }
 0x256   : > { %v2995_v44 = vpop.f32.mrf.mxu1 }
 0x258   : > { %v2997_v45 = vpop.f32.mrf.mxu1 }
 0x25a   : > { %v2999_v60 = vpop.f32.mrf.mxu1 }
 0x25c   : > { %v3001_v46 = vpop.f32.mrf.mxu1 }
 0x25e   : > { %v942_v47 = vpop.f32.mrf.mxu1 }
 0x260   : > { %v946_v48 = vpop.f32.mrf.mxu1 }
 0x262   : > { %v948_v59 = vpop.f32.mrf.mxu1 }
 0x264   : > { %v952_v49 = vpop.f32.mrf.mxu1 }
 0x266   : > { %v954_v10 = vpop.f32.mrf.mxu1 }
 0x267   : > { %v955_v32 = vadd.f32 %v954_v10, %v799_v11  ;;  %v774_v10 = vpop.permute.xlu0 %773 }
 0x268   : > { %v958_v0 = vpop.f32.mrf.mxu1 }
 0x269   : > { %v959_v30 = vadd.f32 %v958_v0, %v804_v55  ;;  %v943_v0 = vadd.f32 %v942_v47, %v789_v21  ;;  %v931_v47 = vadd.f32 %v2995_v44, %v779_v2 }
 0x26a   : > { %v960_v57 = vpop.f32.mrf.mxu1 }
 0x26b   : > { %v961_v5 = vadd.f32 %v960_v57, %v804_v55  ;;  %v947_v57 = vadd.f32 %v946_v48, %v794_v53  ;;  %v1008_v55 = vmul.f32 0.4, %v955_v32  ;;  %v935_v48 = vadd.f32 %v2997_v45, %v784_v4 }
 0x26c   : > { %v964_v15 = vpop.f32.mrf.mxu1  ;;  %v923_v45 = vadd.f32 %v2989_v42, %v774_v10 }
 0x26d   : > { %v965_v26 = vadd.f32 %v964_v15, %v809_v56 }
 0x26e   : > { %v966_v13 = vpop.f32.mrf.mxu1 }
 0x26f   : > { %v967_v24 = vadd.f32 %v966_v13, %v809_v56  ;;  %v949_v13 = vadd.f32 %v948_v59, %v794_v53  ;;  %v1009_v56 = vmul.f32 0.4, %v959_v30  ;;  %v1005_v53 = vmul.f32 0.4, %v947_v57 }
 0x270   : > { %v970_v12 = vpop.f32.mrf.mxu1 }
 0x271   : > { %v971_v51 = vadd.f32 %v970_v12, %v814_v17  ;;  %v1012_v33 = vmul.f32 0.4, %v967_v24  ;;  %v1010_v12 = vmul.f32 0.4, %v961_v5  ;;  %v1006_v59 = vmul.f32 0.4, %v949_v13 }
 0x272   : > { %v972_v16 = vpop.f32.mrf.mxu1 }
 0x273   : > { %v973_v8 = vadd.f32 %v972_v16, %v814_v17  ;;  %v1013_v31 = vmul.f32 0.4, %v971_v51 }
 0x274   : > { %v976_v18 = vpop.f32.mrf.mxu1 }
 0x275   : > { %v977_v22 = vadd.f32 %v976_v18, %v819_v14  ;;  %v1014_v28 = vmul.f32 0.4, %v973_v8  ;;  %v1045_v16 = vmax.f32 %v971_v51, %v1013_v31  ;;  %v1044_v18 = vmax.f32 %v967_v24, %v1012_v33  ;;  %v764_v24 = vpop.permute.xlu0 %763 }
 0x276   : > { %v978_v54 = vpop.f32.mrf.mxu1  ;;  %v911_v42 = vadd.f32 %v2981_v39, %v764_v24  ;;  %v997_v31 = vmul.f32 0.4, %v923_v45 }
 0x277   : > { %v979_v20 = vadd.f32 %v978_v54, %v819_v14  ;;  %v1015_v27 = vmul.f32 0.4, %v977_v22  ;;  %v1011_v14 = vmul.f32 0.4, %v965_v26  ;;  %v1046_v15 = vmax.f32 %v973_v8, %v1014_v28 }
 0x278   : > { %v982_v19 = vpop.f32.mrf.mxu1  ;;  %v941_v54 = vadd.f32 %v3001_v46, %v789_v21  ;;  %v1040_v8 = vmax.f32 %v955_v32, %v1008_v55  ;;  %v929_v46 = vadd.f32 %v2993_v61, %v779_v2 }
 0x279   : > { %v983_v9 = vadd.f32 %v982_v19, %v824_v58  ;;  %v1016_v25 = vmul.f32 0.4, %v979_v20  ;;  %v1047_v17 = vmax.f32 %v977_v22, %v1015_v27  ;;  %v1041_v22 = vmax.f32 %v959_v30, %v1009_v56 }
 0x27a   : > { %v984_v23 = vpop.f32.mrf.mxu1  ;;  %v999_v28 = vmul.f32 0.4, %v929_v46 }
 0x27b   : > { %v985_v52 = vadd.f32 %v984_v23, %v824_v58  ;;  %v1017_v7 = vmul.f32 0.4, %v983_v9  ;;  %v1048_v34 = vmax.f32 %v979_v20, %v1016_v25  ;;  %v953_v58 = vadd.f32 %v952_v49, %v799_v11 }
 0x27c   : > { %v1043_v49 = vmax.f32 %v965_v26, %v1011_v14  ;;  %v937_v11 = vadd.f32 %v2999_v60, %v784_v4  ;;  %v1042_v20 = vmax.f32 %v961_v5, %v1010_v12  ;;  %v1004_v23 = vmul.f32 0.4, %v943_v0 }
 0x27d   : > { %v1018_v6 = vmul.f32 0.4, %v985_v52  ;;  %v1049_v3 = vmax.f32 %v983_v9, %v1017_v7  ;;  %v1007_v19 = vmul.f32 0.4, %v953_v58  ;;  %v769_v9 = vpop.permute.xlu1 %768  ;;  %v925_v60 = vadd.f32 %v2991_v43, %v774_v10 }
 0x27e   : > { %v1002_v51 = vmul.f32 0.4, %v937_v11  ;;  %v1038_v7 = vmax.f32 %v949_v13, %v1006_v59  ;;  %v1001_v25 = vmul.f32 0.4, %v935_v48  ;;  %v919_v44 = vadd.f32 %v2987_v62, %v769_v9 }
 0x27f   : > { %v1050_v29 = vmax.f32 %v985_v52, %v1018_v6  ;;  %v1003_v52 = vmul.f32 0.4, %v941_v54  ;;  %v1039_v21 = vmax.f32 %v953_v58, %v1007_v19  ;;  %v1037_v6 = vmax.f32 %v947_v57, %v1005_v53  ;;  %v2119_v53 = vld [vmem:[%s3363_s2 + $0x98] sm:$0xff] }
 0x280   : > { %v1000_v26 = vmul.f32 0.4, %v931_v47  ;;  %v1036_v27 = vmax.f32 %v943_v0, %v1004_v23  ;;  %v917_v5 = vadd.f32 %v2985_v41, %v769_v9  ;;  %v913_v43 = vadd.f32 %v2983_v40, %v764_v24  ;;  %v2117_v9 = vld [vmem:[%s3363_s2 + $0x88] sm:$0xff]  ;;  %v2122_v23 = vld [vmem:[%s3363_s2 + $0xb0] sm:$0xff] }
 0x281   : > { %1165 = vmatprep.subr.mxu1 %v1050_v29  ;;  %v759_v61 = vpop.permute.xlu1 %758  ;;  %v1035_v29 = vmax.f32 %v941_v54, %v1003_v52  ;;  %v998_v4 = vmul.f32 0.4, %v925_v60  ;;  %v1034_v30 = vmax.f32 %v937_v11, %v1002_v51  ;;  %v996_v32 = vmul.f32 0.4, %v919_v44  ;;  %v2125_v52 = vld [vmem:[%s3363_s2 + $0xc8] sm:$0xff]  ;;  %v2128_v51 = vld [vmem:[%s3363_s2 + $0xe0] sm:$0xff] }
 0x282   : > { %1166 = vmatpush1.msra.mxu1 %v1049_v3  ;;  %v1033_v3 = vmax.f32 %v935_v48, %v1001_v25  ;;  %v907_v62 = vadd.f32 %v2979_v63, %v759_v61  ;;  %v1032_v33 = vmax.f32 %v931_v47, %v1000_v26  ;;  %v905_v41 = vadd.f32 %v2977_v38, %v759_v61  ;;  %v2118_v48 = vld [vmem:[%s3363_s2 + $0x90] sm:$0xff]  ;;  %v2121_v47 = vld [vmem:[%s3363_s2 + $0xa8] sm:$0xff] }
 0x283   : > { %1167 = vmatprep.subr.mxu1 %v1048_v34  ;;  %v754_v34 = vpop.permute.xlu0 %753  ;;  %v995_v2 = vmul.f32 0.4, %v917_v5  ;;  %v1031_v58 = vmax.f32 %v929_v46, %v999_v28  ;;  %v994_v14 = vmul.f32 0.4, %v913_v43  ;;  %v993_v12 = vmul.f32 0.4, %v911_v42 }
 0x284   : > { %1168 = vmatpush1.msra.mxu1 %v1047_v17  ;;  %v901_v40 = vadd.f32 %v2975_v37, %v754_v34  ;;  %v1030_v17 = vmax.f32 %v925_v60, %v998_v4  ;;  %v899_v13 = vadd.f32 %v2973_v1, %v754_v34  ;;  %v992_v57 = vmul.f32 0.4, %v907_v62  ;;  %v2124_v46 = vld [vmem:[%s3363_s2 + $0xc0] sm:$0xff]  ;;  %v2127_v60 = vld [vmem:[%s3363_s2 + $0xd8] sm:$0xff]  ;;  %v2130_v24 = vld [vmem:[%s3363_s2 + $0xf0] sm:$0xff] }
 0x285   : > { %1169 = vmatprep.subr.mxu1 %v1046_v15  ;;  %v749_v39 = vpop.permute.xlu1 %748  ;;  %v1029_v15 = vmax.f32 %v923_v45, %v997_v31  ;;  %v1028_v56 = vmax.f32 %v919_v44, %v996_v32  ;;  %v1027_v0 = vmax.f32 %v917_v5, %v995_v2  ;;  %v1026_v55 = vmax.f32 %v913_v43, %v994_v14  ;;  %v2131_v45 = vld [vmem:[%s3363_s2 + $0xf8] sm:$0xff] }
 0x286   : > { %1170 = vmatpush1.msra.mxu1 %v1045_v16  ;;  %v895_v63 = vadd.f32 %v2971_v36, %v749_v39  ;;  %v893_v38 = vadd.f32 %v2969_v35, %v749_v39  ;;  %v991_v16 = vmul.f32 0.4, %v905_v41  ;;  %v990_v37 = vmul.f32 0.4, %v901_v40 }
 0x287   : > { %1171 = vmatprep.subr.mxu1 %v1044_v18  ;;  %v989_v18 = vmul.f32 0.4, %v899_v13  ;;  %v1025_v10 = vmax.f32 %v911_v42, %v993_v12  ;;  %v1024_v54 = vmax.f32 %v907_v62, %v992_v57 }
 0x288   : > { %1172 = vmatpush1.msra.mxu1 %v1043_v49  ;;  %v988_v1 = vmul.f32 0.4, %v895_v63  ;;  %v987_v19 = vmul.f32 0.4, %v893_v38  ;;  %v1023_v49 = vmax.f32 %v905_v41, %v991_v16  ;;  %v1022_v36 = vmax.f32 %v901_v40, %v990_v37  ;;  %v1163_v40 = vpop.permute.xlu0 %1162 }
 0x289   : > { %1173 = vmatprep.subr.mxu1 %v1042_v20  ;;  %v1021_v11 = vmax.f32 %v899_v13, %v989_v18  ;;  %v2116_v20 = vld [vmem:[%s3363_s2 + $0x80] sm:$0xff] }
 0x28a   : > { %1174 = vmatpush1.msra.mxu1 %v1041_v22  ;;  %v1020_v35 = vmax.f32 %v895_v63, %v988_v1  ;;  %v1019_v59 = vmax.f32 %v893_v38, %v987_v19  ;;  %v2120_v22 = vld [vmem:[%s3363_s2 + $0xa0] sm:$0xff] }
 0x28b   : > { %1175 = vmatprep.subr.mxu1 %v1040_v8  ;;  %v2123_v8 = vld [vmem:[%s3363_s2 + $0xb8] sm:$0xff] }
 0x28c   : > { %1176 = vmatpush1.msra.mxu1 %v1039_v21  ;;  %v2126_v21 = vld [vmem:[%s3363_s2 + $0xd0] sm:$0xff]  ;;  %v1153_v12 = vpop.permute.xlu0 %1152 }
 0x28d   : > { %1177 = vmatprep.subr.mxu1 %v1038_v7  ;;  %v2129_v7 = vld [vmem:[%s3363_s2 + $0xe8] sm:$0xff] }
 0x28e   : > { %1178 = vmatpush1.msra.mxu1 %v1037_v6 }
 0x28f   : > { %1179 = vmatprep.subr.mxu1 %v1036_v27 }
 0x290   : > { %1180 = vmatpush1.msra.mxu1 %v1035_v29  ;;  %v1143_v38 = vpop.permute.xlu0 %1142 }
 0x291   : > { %1181 = vmatprep.subr.mxu1 %v1034_v30 }
 0x292   : > { %1182 = vmatpush1.msra.mxu1 %v1033_v3 }
 0x293   : > { %1183 = vmatprep.subr.mxu1 %v1032_v33 }
 0x294   : > { %1184 = vmatpush1.msra.mxu1 %v1031_v58  ;;  %v1133_v1 = vpop.permute.xlu0 %1132 }
 0x295   : > { %1185 = vmatprep.subr.mxu1 %v1030_v17  ;;  %v1158_v17 = vpop.permute.xlu1 %1157 }
 0x296   : > { %1186 = vmatpush1.msra.mxu1 %v1029_v15 }
 0x297   : > { %1187 = vmatprep.subr.mxu1 %v1028_v56 }
 0x298   : > { %1188 = vmatpush1.msra.mxu1 %v1027_v0 }
 0x299   : > { %1189 = vmatprep.subr.mxu1 %v1026_v55  ;;  %v1148_v63 = vpop.permute.xlu1 %1147 }
 0x29a   : > { %1190 = vmatpush1.msra.mxu1 %v1025_v10 }
 0x29b   : > { %1191 = vmatprep.subr.mxu1 %v1024_v54 }
 0x29c   : > { %1192 = vmatpush1.msra.mxu1 %v1023_v49 }
 0x29d   : > { %1193 = vmatprep.subr.mxu1 %v1022_v36  ;;  %v1138_v0 = vpop.permute.xlu1 %1137 }
 0x29e   : > { %1194 = vmatpush1.msra.mxu1 %v1021_v11 }
 0x29f   : > { %1195 = vmatprep.subr.mxu1 %v1020_v35 }
 0x2a0   : > { %1196 = vmatpush1.msra.mxu1 %v1019_v59 }
 0x2a1   : > { %1230 = vmatmul.mubr.f32.vlgmr.msra.gmra.mxu1 %v2116_v20  ;;  %v1128_v11 = vpop.permute.xlu1 %1127 }
 0x2a2   : > { %1235 = vmatprep.mubr.f32.mxu1 %v2428_v50 }
 0x2a5   : > { %1236 = vmatmul.mubr.f32.gmra.mxu1 %v2117_v9 }
 0x2a6   : > { %1241 = vmatprep.mubr.f32.mxu1 %v2428_v50 }
 0x2a9   : > { %1242 = vmatmul.mubr.f32.gmra.mxu1 %v2118_v48 }
 0x2aa   : > { %1247 = vmatprep.mubr.f32.mxu1 %v2428_v50 }
 0x2ad   : > { %1248 = vmatmul.mubr.f32.gmra.mxu1 %v2119_v53 }
 0x2ae   : > { %1253 = vmatprep.mubr.f32.mxu1 %v2428_v50 }
 0x2b1   : > { %1254 = vmatmul.mubr.f32.gmra.mxu1 %v2120_v22 }
 0x2b2   : > { %1259 = vmatprep.mubr.f32.mxu1 %v2428_v50 }
 0x2b5   : > { %1260 = vmatmul.mubr.f32.gmra.mxu1 %v2121_v47 }
 0x2b6   : > { %1265 = vmatprep.mubr.f32.mxu1 %v2428_v50 }
 0x2b9   : > { %1266 = vmatmul.mubr.f32.gmra.mxu1 %v2122_v23 }
 0x2ba   : > { %1271 = vmatprep.mubr.f32.mxu1 %v2428_v50 }
 0x2bd   : > { %1272 = vmatmul.mubr.f32.gmra.mxu1 %v2123_v8 }
 0x2be   : > { %1277 = vmatprep.mubr.f32.mxu1 %v2428_v50 }
 0x2c1   : > { %1278 = vmatmul.mubr.f32.gmra.mxu1 %v2124_v46  ;;  %v1123_v46 = vpop.permute.xlu0 %1122 }
 0x2c2   : > { %1283 = vmatprep.mubr.f32.mxu1 %v2428_v50 }
 0x2c5   : > { %1284 = vmatmul.mubr.f32.gmra.mxu1 %v2125_v52 }
 0x2c6   : > { %1289 = vmatprep.mubr.f32.mxu1 %v2428_v50 }
 0x2c9   : > { %1290 = vmatmul.mubr.f32.gmra.mxu1 %v2126_v21 }
 0x2ca   : > { %1295 = vmatprep.mubr.f32.mxu1 %v2428_v50 }
 0x2cd   : > { %1296 = vmatmul.mubr.f32.gmra.mxu1 %v2127_v60 }
 0x2ce   : > { %1301 = vmatprep.mubr.f32.mxu1 %v2428_v50 }
 0x2d1   : > { %1302 = vmatmul.mubr.f32.gmra.mxu1 %v2128_v51 }
 0x2d2   : > { %1307 = vmatprep.mubr.f32.mxu1 %v2428_v50 }
 0x2d5   : > { %1308 = vmatmul.mubr.f32.gmra.mxu1 %v2129_v7 }
 0x2d6   : > { %1313 = vmatprep.mubr.f32.mxu1 %v2428_v50 }
 0x2d9   : > { %1314 = vmatmul.mubr.f32.gmra.mxu1 %v2130_v24 }
 0x2da   : > { %1319 = vmatprep.mubr.f32.mxu1 %v2428_v50 }
 0x2dd   : > { %1320 = vmatmul.mubr.f32.gmra.mxu1 %v2131_v45  ;;  %v1118_v45 = vpop.permute.xlu1 %1117 }
 0x2de   : > { %1910 = vmatprep.mubr.f32.mxu1 %v2428_v50 }
 0x361   : > { %v3084_v25 = vpop.f32.mrf.mxu1 }
 0x363   : > { %v3086_v6 = vpop.f32.mrf.mxu1 }
 0x365   : > { %v3088_v44 = vpop.f32.mrf.mxu1 }
 0x367   : > { %v3090_v26 = vpop.f32.mrf.mxu1 }
 0x369   : > { %v3092_v27 = vpop.f32.mrf.mxu1 }
 0x36b   : > { %v3094_v61 = vpop.f32.mrf.mxu1 }
 0x36d   : > { %v3096_v5 = vpop.f32.mrf.mxu1 }
 0x36f   : > { %v3098_v28 = vpop.f32.mrf.mxu1 }
 0x371   : > { %v3100_v29 = vpop.f32.mrf.mxu1 }
 0x373   : > { %v3102_v43 = vpop.f32.mrf.mxu1 }
 0x375   : > { %v3104_v4 = vpop.f32.mrf.mxu1 }
 0x377   : > { %v3106_v30 = vpop.f32.mrf.mxu1 }
 0x379   : > { %v3108_v42 = vpop.f32.mrf.mxu1 }
 0x37b   : > { %v3110_v31 = vpop.f32.mrf.mxu1 }
 0x37d   : > { %v3112_v3 = vpop.f32.mrf.mxu1 }
 0x37f   : > { %v3114_v62 = vpop.f32.mrf.mxu1 }
 0x381   : > { %v3116_v32 = vpop.f32.mrf.mxu1 }
 0x383   : > { %v1281_v33 = vpop.f32.mrf.mxu1 }
 0x385   : > { %v1285_v34 = vpop.f32.mrf.mxu1 }
 0x387   : > { %v1287_v41 = vpop.f32.mrf.mxu1 }
 0x389   : > { %v1291_v2 = vpop.f32.mrf.mxu1 }
 0x38b   : > { %v1293_v58 = vpop.f32.mrf.mxu1 }
 0x38c   : > { %v1294_v51 = vadd.f32 %v1293_v58, %v1138_v0  ;;  %v1113_v58 = vpop.permute.xlu0 %1112 }
 0x38d   : > { %v1297_v14 = vpop.f32.mrf.mxu1 }
 0x38e   : > { %v1298_v52 = vadd.f32 %v1297_v14, %v1143_v38  ;;  %v1282_v14 = vadd.f32 %v1281_v33, %v1128_v11  ;;  %v1270_v33 = vadd.f32 %v3110_v31, %v1118_v45 }
 0x38f   : > { %v1299_v39 = vpop.f32.mrf.mxu1 }
 0x390   : > { %v1300_v47 = vadd.f32 %v1299_v39, %v1143_v38  ;;  %v1286_v39 = vadd.f32 %v1285_v34, %v1133_v1  ;;  %v1347_v38 = vmul.f32 0.4, %v1294_v51  ;;  %v1274_v34 = vadd.f32 %v3112_v3, %v1123_v46 }
 0x391   : > { %v1303_v13 = vpop.f32.mrf.mxu1  ;;  %v1262_v3 = vadd.f32 %v3104_v4, %v1113_v58 }
 0x392   : > { %v1304_v53 = vadd.f32 %v1303_v13, %v1148_v63 }
 0x393   : > { %v1305_v15 = vpop.f32.mrf.mxu1 }
 0x394   : > { %v1306_v20 = vadd.f32 %v1305_v15, %v1148_v63  ;;  %v1288_v15 = vadd.f32 %v1287_v41, %v1133_v1  ;;  %v1348_v63 = vmul.f32 0.4, %v1298_v52  ;;  %v1344_v1 = vmul.f32 0.4, %v1286_v39 }
 0x395   : > { %v1309_v57 = vpop.f32.mrf.mxu1 }
 0x396   : > { %v1310_v35 = vadd.f32 %v1309_v57, %v1153_v12  ;;  %v1351_v7 = vmul.f32 0.4, %v1306_v20  ;;  %v1349_v57 = vmul.f32 0.4, %v1300_v47  ;;  %v1345_v41 = vmul.f32 0.4, %v1288_v15 }
 0x397   : > { %v1311_v56 = vpop.f32.mrf.mxu1 }
 0x398   : > { %v1312_v49 = vadd.f32 %v1311_v56, %v1153_v12  ;;  %v1352_v21 = vmul.f32 0.4, %v1310_v35 }
 0x399   : > { %v1315_v16 = vpop.f32.mrf.mxu1 }
 0x39a   : > { %v1316_v54 = vadd.f32 %v1315_v16, %v1158_v17  ;;  %v1353_v23 = vmul.f32 0.4, %v1312_v49  ;;  %v1384_v56 = vmax.f32 %v1310_v35, %v1352_v21  ;;  %v1383_v16 = vmax.f32 %v1306_v20, %v1351_v7  ;;  %v1103_v20 = vpop.permute.xlu0 %1102 }
 0x39b   : > { %v1317_v37 = vpop.f32.mrf.mxu1  ;;  %v1250_v4 = vadd.f32 %v3096_v5, %v1103_v20  ;;  %v1336_v21 = vmul.f32 0.4, %v1262_v3 }
 0x39c   : > { %v1318_v18 = vadd.f32 %v1317_v37, %v1158_v17  ;;  %v1354_v22 = vmul.f32 0.4, %v1316_v54  ;;  %v1350_v17 = vmul.f32 0.4, %v1304_v53  ;;  %v1385_v13 = vmax.f32 %v1312_v49, %v1353_v23 }
 0x39d   : > { %v1321_v55 = vpop.f32.mrf.mxu1  ;;  %v1280_v37 = vadd.f32 %v3116_v32, %v1128_v11  ;;  %v1379_v49 = vmax.f32 %v1294_v51, %v1347_v38  ;;  %v1268_v32 = vadd.f32 %v3108_v42, %v1118_v45 }
 0x39e   : > { %v1322_v10 = vadd.f32 %v1321_v55, %v1163_v40  ;;  %v1355_v9 = vmul.f32 0.4, %v1318_v18  ;;  %v1386_v12 = vmax.f32 %v1316_v54, %v1354_v22  ;;  %v1380_v54 = vmax.f32 %v1298_v52, %v1348_v63 }
 0x39f   : > { %v1323_v19 = vpop.f32.mrf.mxu1  ;;  %v1338_v23 = vmul.f32 0.4, %v1268_v32 }
 0x3a0   : > { %v1324_v36 = vadd.f32 %v1323_v19, %v1163_v40  ;;  %v1356_v59 = vmul.f32 0.4, %v1322_v10  ;;  %v1387_v24 = vmax.f32 %v1318_v18, %v1355_v9  ;;  %v1292_v40 = vadd.f32 %v1291_v2, %v1138_v0 }
 0x3a1   : > { %v1382_v2 = vmax.f32 %v1304_v53, %v1350_v17  ;;  %v1276_v0 = vadd.f32 %v3114_v62, %v1123_v46  ;;  %v1381_v18 = vmax.f32 %v1300_v47, %v1349_v57  ;;  %v1343_v19 = vmul.f32 0.4, %v1282_v14 }
 0x3a2   : > { %v1357_v48 = vmul.f32 0.4, %v1324_v36  ;;  %v1388_v60 = vmax.f32 %v1322_v10, %v1356_v59  ;;  %v1346_v55 = vmul.f32 0.4, %v1292_v40  ;;  %v1108_v10 = vpop.permute.xlu1 %1107  ;;  %v1264_v62 = vadd.f32 %v3106_v30, %v1113_v58 }
 0x3a3   : > { %v1341_v35 = vmul.f32 0.4, %v1276_v0  ;;  %v1377_v59 = vmax.f32 %v1288_v15, %v1345_v41  ;;  %v1340_v9 = vmul.f32 0.4, %v1274_v34  ;;  %v1258_v31 = vadd.f32 %v3102_v43, %v1108_v10 }
 0x3a4   : > { %v1389_v8 = vmax.f32 %v1324_v36, %v1357_v48  ;;  %v1342_v36 = vmul.f32 0.4, %v1280_v37  ;;  %v1378_v11 = vmax.f32 %v1292_v40, %v1346_v55  ;;  %v1376_v48 = vmax.f32 %v1286_v39, %v1344_v1  ;;  %v2151_v1 = vld [vmem:[%s3363_s2 + $0x118] sm:$0xff] }
 0x3a5   : > { %v1339_v53 = vmul.f32 0.4, %v1270_v33  ;;  %v1375_v22 = vmax.f32 %v1282_v14, %v1343_v19  ;;  %v1256_v47 = vadd.f32 %v3100_v29, %v1108_v10  ;;  %v1252_v30 = vadd.f32 %v3098_v28, %v1103_v20  ;;  %v2149_v10 = vld [vmem:[%s3363_s2 + $0x108] sm:$0xff]  ;;  %v2154_v19 = vld [vmem:[%s3363_s2 + $0x130] sm:$0xff] }
 0x3a6   : > { %1504 = vmatprep.subr.mxu0 %v1389_v8  ;;  %v1098_v42 = vpop.permute.xlu1 %1097  ;;  %v1374_v8 = vmax.f32 %v1280_v37, %v1342_v36  ;;  %v1337_v46 = vmul.f32 0.4, %v1264_v62  ;;  %v1373_v52 = vmax.f32 %v1276_v0, %v1341_v35  ;;  %v1335_v51 = vmul.f32 0.4, %v1258_v31  ;;  %v2157_v36 = vld [vmem:[%s3363_s2 + $0x148] sm:$0xff]  ;;  %v2160_v35 = vld [vmem:[%s3363_s2 + $0x160] sm:$0xff] }
 0x3a7   : > { %1505 = vmatpush1.msra.mxu0 %v1388_v60  ;;  %v1372_v60 = vmax.f32 %v1274_v34, %v1340_v9  ;;  %v1246_v43 = vadd.f32 %v3094_v61, %v1098_v42  ;;  %v1371_v7 = vmax.f32 %v1270_v33, %v1339_v53  ;;  %v1244_v29 = vadd.f32 %v3092_v27, %v1098_v42  ;;  %v2150_v34 = vld [vmem:[%s3363_s2 + $0x110] sm:$0xff]  ;;  %v2153_v33 = vld [vmem:[%s3363_s2 + $0x128] sm:$0xff] }
 0x3a8   : > { %1506 = vmatprep.subr.mxu0 %v1387_v24  ;;  %v1093_v24 = vpop.permute.xlu0 %1092  ;;  %v1334_v45 = vmul.f32 0.4, %v1256_v47  ;;  %v1370_v40 = vmax.f32 %v1268_v32, %v1338_v23  ;;  %v1333_v17 = vmul.f32 0.4, %v1252_v30  ;;  %v1332_v57 = vmul.f32 0.4, %v1250_v4 }
 0x3a9   : > { %1507 = vmatpush1.msra.mxu0 %v1386_v12  ;;  %v1240_v28 = vadd.f32 %v3090_v26, %v1093_v24  ;;  %v1369_v12 = vmax.f32 %v1264_v62, %v1337_v46  ;;  %v1238_v15 = vadd.f32 %v3088_v44, %v1093_v24  ;;  %v1331_v39 = vmul.f32 0.4, %v1246_v43  ;;  %v2156_v32 = vld [vmem:[%s3363_s2 + $0x140] sm:$0xff]  ;;  %v2159_v62 = vld [vmem:[%s3363_s2 + $0x158] sm:$0xff]  ;;  %v2162_v20 = vld [vmem:[%s3363_s2 + $0x170] sm:$0xff] }
 0x3aa   : > { %1508 = vmatprep.subr.mxu0 %v1385_v13  ;;  %v1088_v5 = vpop.permute.xlu1 %1087  ;;  %v1368_v13 = vmax.f32 %v1262_v3, %v1336_v21  ;;  %v1367_v63 = vmax.f32 %v1258_v31, %v1335_v51  ;;  %v1366_v14 = vmax.f32 %v1256_v47, %v1334_v45  ;;  %v1365_v38 = vmax.f32 %v1252_v30, %v1333_v17  ;;  %v2163_v3 = vld [vmem:[%s3363_s2 + $0x178] sm:$0xff] }
 0x3ab   : > { %1509 = vmatpush1.msra.mxu0 %v1384_v56  ;;  %v1234_v61 = vadd.f32 %v3086_v6, %v1088_v5  ;;  %v1232_v27 = vadd.f32 %v3084_v25, %v1088_v5  ;;  %v1330_v56 = vmul.f32 0.4, %v1244_v29  ;;  %v1329_v26 = vmul.f32 0.4, %v1240_v28 }
 0x3ac   : > { %1510 = vmatprep.subr.mxu0 %v1383_v16  ;;  %v1328_v16 = vmul.f32 0.4, %v1238_v15  ;;  %v1364_v58 = vmax.f32 %v1250_v4, %v1332_v57  ;;  %v1363_v37 = vmax.f32 %v1246_v43, %v1331_v39 }
 0x3ad   : > { %1511 = vmatpush1.msra.mxu0 %v1382_v2  ;;  %v1327_v44 = vmul.f32 0.4, %v1234_v61  ;;  %v1326_v55 = vmul.f32 0.4, %v1232_v27  ;;  %v1362_v2 = vmax.f32 %v1244_v29, %v1330_v56  ;;  %v1361_v6 = vmax.f32 %v1240_v28, %v1329_v26  ;;  %v1502_v28 = vpop.permute.xlu0 %1501 }
 0x3ae   : > { %1512 = vmatprep.subr.mxu0 %v1381_v18  ;;  %v1360_v0 = vmax.f32 %v1238_v15, %v1328_v16  ;;  %v2148_v18 = vld [vmem:[%s3363_s2 + $0x100] sm:$0xff] }
 0x3af   : > { %1513 = vmatpush1.msra.mxu0 %v1380_v54  ;;  %v1359_v25 = vmax.f32 %v1234_v61, %v1327_v44  ;;  %v1358_v41 = vmax.f32 %v1232_v27, %v1326_v55  ;;  %v2152_v54 = vld [vmem:[%s3363_s2 + $0x120] sm:$0xff] }
 0x3b0   : > { %1514 = vmatprep.subr.mxu0 %v1379_v49  ;;  %v2155_v49 = vld [vmem:[%s3363_s2 + $0x138] sm:$0xff] }
 0x3b1   : > { %1515 = vmatpush1.msra.mxu0 %v1378_v11  ;;  %v2158_v11 = vld [vmem:[%s3363_s2 + $0x150] sm:$0xff]  ;;  %v1492_v57 = vpop.permute.xlu0 %1491 }
 0x3b2   : > { %1516 = vmatprep.subr.mxu0 %v1377_v59  ;;  %v2161_v59 = vld [vmem:[%s3363_s2 + $0x168] sm:$0xff] }
 0x3b3   : > { %1517 = vmatpush1.msra.mxu0 %v1376_v48 }
 0x3b4   : > { %1518 = vmatprep.subr.mxu0 %v1375_v22 }
 0x3b5   : > { %1519 = vmatpush1.msra.mxu0 %v1374_v8  ;;  %v1482_v27 = vpop.permute.xlu0 %1481 }
 0x3b6   : > { %1520 = vmatprep.subr.mxu0 %v1373_v52 }
 0x3b7   : > { %1521 = vmatpush1.msra.mxu0 %v1372_v60 }
 0x3b8   : > { %1522 = vmatprep.subr.mxu0 %v1371_v7 }
 0x3b9   : > { %1523 = vmatpush1.msra.mxu0 %v1370_v40  ;;  %v1472_v44 = vpop.permute.xlu0 %1471 }
 0x3ba   : > { %1524 = vmatprep.subr.mxu0 %v1369_v12  ;;  %v1497_v12 = vpop.permute.xlu1 %1496 }
 0x3bb   : > { %1525 = vmatpush1.msra.mxu0 %v1368_v13 }
 0x3bc   : > { %1526 = vmatprep.subr.mxu0 %v1367_v63 }
 0x3bd   : > { %1527 = vmatpush1.msra.mxu0 %v1366_v14 }
 0x3be   : > { %1528 = vmatprep.subr.mxu0 %v1365_v38  ;;  %v1487_v61 = vpop.permute.xlu1 %1486 }
 0x3bf   : > { %1529 = vmatpush1.msra.mxu0 %v1364_v58 }
 0x3c0   : > { %1530 = vmatprep.subr.mxu0 %v1363_v37 }
 0x3c1   : > { %1531 = vmatpush1.msra.mxu0 %v1362_v2 }
 0x3c2   : > { %1532 = vmatprep.subr.mxu0 %v1361_v6  ;;  %v1477_v14 = vpop.permute.xlu1 %1476 }
 0x3c3   : > { %1533 = vmatpush1.msra.mxu0 %v1360_v0 }
 0x3c4   : > { %1534 = vmatprep.subr.mxu0 %v1359_v25 }
 0x3c5   : > { %1535 = vmatpush1.msra.mxu0 %v1358_v41 }
 0x3c6   : > { %1569 = vmatmul.mubr.f32.vlgmr.msra.gmra.mxu0 %v2148_v18  ;;  %v1467_v0 = vpop.permute.xlu1 %1466 }
 0x3c7   : > { %1574 = vmatprep.mubr.f32.mxu0 %v2428_v50 }
 0x3ca   : > { %1575 = vmatmul.mubr.f32.gmra.mxu0 %v2149_v10 }
 0x3cb   : > { %1580 = vmatprep.mubr.f32.mxu0 %v2428_v50 }
 0x3ce   : > { %1581 = vmatmul.mubr.f32.gmra.mxu0 %v2150_v34 }
 0x3cf   : > { %1586 = vmatprep.mubr.f32.mxu0 %v2428_v50 }
 0x3d2   : > { %1587 = vmatmul.mubr.f32.gmra.mxu0 %v2151_v1 }
 0x3d3   : > { %1592 = vmatprep.mubr.f32.mxu0 %v2428_v50 }
 0x3d6   : > { %1593 = vmatmul.mubr.f32.gmra.mxu0 %v2152_v54 }
 0x3d7   : > { %1598 = vmatprep.mubr.f32.mxu0 %v2428_v50 }
 0x3da   : > { %1599 = vmatmul.mubr.f32.gmra.mxu0 %v2153_v33 }
 0x3db   : > { %1604 = vmatprep.mubr.f32.mxu0 %v2428_v50 }
 0x3de   : > { %1605 = vmatmul.mubr.f32.gmra.mxu0 %v2154_v19 }
 0x3df   : > { %1610 = vmatprep.mubr.f32.mxu0 %v2428_v50 }
 0x3e2   : > { %1611 = vmatmul.mubr.f32.gmra.mxu0 %v2155_v49 }
 0x3e3   : > { %1616 = vmatprep.mubr.f32.mxu0 %v2428_v50 }
 0x3e6   : > { %1617 = vmatmul.mubr.f32.gmra.mxu0 %v2156_v32  ;;  %v1462_v32 = vpop.permute.xlu0 %1461 }
 0x3e7   : > { %1622 = vmatprep.mubr.f32.mxu0 %v2428_v50 }
 0x3ea   : > { %1623 = vmatmul.mubr.f32.gmra.mxu0 %v2157_v36 }
 0x3eb   : > { %1628 = vmatprep.mubr.f32.mxu0 %v2428_v50 }
 0x3ee   : > { %1629 = vmatmul.mubr.f32.gmra.mxu0 %v2158_v11 }
 0x3ef   : > { %1634 = vmatprep.mubr.f32.mxu0 %v2428_v50 }
 0x3f2   : > { %1635 = vmatmul.mubr.f32.gmra.mxu0 %v2159_v62 }
 0x3f3   : > { %1640 = vmatprep.mubr.f32.mxu0 %v2428_v50 }
 0x3f6   : > { %1641 = vmatmul.mubr.f32.gmra.mxu0 %v2160_v35 }
 0x3f7   : > { %1646 = vmatprep.mubr.f32.mxu0 %v2428_v50 }
 0x3fa   : > { %1647 = vmatmul.mubr.f32.gmra.mxu0 %v2161_v59 }
 0x3fb   : > { %1652 = vmatprep.mubr.f32.mxu0 %v2428_v50 }
 0x3fe   : > { %1653 = vmatmul.mubr.f32.gmra.mxu0 %v2162_v20 }
 0x3ff   : > { %1658 = vmatprep.mubr.f32.mxu0 %v2428_v50 }
 0x402   : > { %1659 = vmatmul.mubr.f32.gmra.mxu0 %v2163_v3  ;;  %v1457_v3 = vpop.permute.xlu1 %1456 }
 0x403   : > { %1892 = vmatprep.mubr.f32.mxu0 %v2428_v50 }
 0x486   : > { %v3199_v9 = vpop.f32.mrf.mxu0 }
 0x488   : > { %v3201_v48 = vpop.f32.mrf.mxu0 }
 0x48a   : > { %v3203_v31 = vpop.f32.mrf.mxu0 }
 0x48c   : > { %v3205_v53 = vpop.f32.mrf.mxu0 }
 0x48e   : > { %v3207_v22 = vpop.f32.mrf.mxu0 }
 0x490   : > { %v3209_v42 = vpop.f32.mrf.mxu0 }
 0x492   : > { %v3211_v47 = vpop.f32.mrf.mxu0 }
 0x494   : > { %v3213_v23 = vpop.f32.mrf.mxu0 }
 0x496   : > { %v3215_v8 = vpop.f32.mrf.mxu0 }
 0x498   : > { %v3217_v30 = vpop.f32.mrf.mxu0 }
 0x49a   : > { %v3219_v46 = vpop.f32.mrf.mxu0 }
 0x49c   : > { %v3221_v52 = vpop.f32.mrf.mxu0 }
 0x49e   : > { %v3223_v4 = vpop.f32.mrf.mxu0 }
 0x4a0   : > { %v3225_v21 = vpop.f32.mrf.mxu0 }
 0x4a2   : > { %v3227_v60 = vpop.f32.mrf.mxu0 }
 0x4a4   : > { %v3229_v43 = vpop.f32.mrf.mxu0 }
 0x4a6   : > { %v3231_v51 = vpop.f32.mrf.mxu0 }
 0x4a8   : > { %v3233_v7 = vpop.f32.mrf.mxu0 }
 0x4aa   : > { %v1624_v24 = vpop.f32.mrf.mxu0 }
 0x4ac   : > { %v1626_v29 = vpop.f32.mrf.mxu0 }
 0x4ae   : > { %v1630_v45 = vpop.f32.mrf.mxu0 }
 0x4b0   : > { %v1632_v40 = vpop.f32.mrf.mxu0 }
 0x4b1   : > { %v1633_v35 = vadd.f32 %v1632_v40, %v1477_v14  ;;  %v1621_v40 = vadd.f32 %v3233_v7, %v1467_v0  ;;  %v1613_v7 = vadd.f32 %v3227_v60, %v1462_v32 }
 0x4b2   : > { %v1636_v17 = vpop.f32.mrf.mxu0 }
 0x4b3   : > { %v1637_v36 = vadd.f32 %v1636_v17, %v1482_v27 }
 0x4b4   : > { %v1638_v5 = vpop.f32.mrf.mxu0 }
 0x4b5   : > { %v1639_v33 = vadd.f32 %v1638_v5, %v1482_v27  ;;  %v1687_v17 = vmul.f32 0.4, %v1637_v36 }
 0x4b6   : > { %v1642_v15 = vpop.f32.mrf.mxu0 }
 0x4b7   : > { %v1643_v1 = vadd.f32 %v1642_v15, %v1487_v61  ;;  %v1627_v15 = vadd.f32 %v1626_v29, %v1472_v44 }
 0x4b8   : > { %v1644_v13 = vpop.f32.mrf.mxu0 }
 0x4b9   : > { %v1645_v18 = vadd.f32 %v1644_v13, %v1487_v61  ;;  %v1688_v13 = vmul.f32 0.4, %v1639_v33  ;;  %v1625_v61 = vadd.f32 %v1624_v24, %v1472_v44  ;;  %v1684_v24 = vmul.f32 0.4, %v1627_v15 }
 0x4ba   : > { %v1648_v39 = vpop.f32.mrf.mxu0  ;;  %v1719_v44 = vmax.f32 %v1637_v36, %v1687_v17 }
 0x4bb   : > { %v1649_v25 = vadd.f32 %v1648_v39, %v1492_v57  ;;  %v1690_v59 = vmul.f32 0.4, %v1645_v18  ;;  %v1716_v60 = vmax.f32 %v1627_v15, %v1684_v24 }
 0x4bc   : > { %v1650_v63 = vpop.f32.mrf.mxu0 }
 0x4bd   : > { %v1651_v2 = vadd.f32 %v1650_v63, %v1492_v57  ;;  %v1691_v11 = vmul.f32 0.4, %v1649_v25  ;;  %v1686_v63 = vmul.f32 0.4, %v1633_v35  ;;  %v1722_v27 = vmax.f32 %v1645_v18, %v1690_v59 }
 0x4be   : > { %v1654_v56 = vpop.f32.mrf.mxu0 }
 0x4bf   : > { %v1655_v37 = vadd.f32 %v1654_v56, %v1497_v12  ;;  %v1692_v19 = vmul.f32 0.4, %v1651_v2  ;;  %v1723_v39 = vmax.f32 %v1649_v25, %v1691_v11  ;;  %v1619_v56 = vadd.f32 %v3231_v51, %v1467_v0 }
 0x4c0   : > { %v1656_v26 = vpop.f32.mrf.mxu0  ;;  %v1682_v51 = vmul.f32 0.4, %v1621_v40 }
 0x4c1   : > { %v1657_v16 = vadd.f32 %v1656_v26, %v1497_v12  ;;  %v1693_v54 = vmul.f32 0.4, %v1655_v37  ;;  %v1689_v12 = vmul.f32 0.4, %v1643_v1  ;;  %v1724_v5 = vmax.f32 %v1651_v2, %v1692_v19 }
 0x4c2   : > { %v1660_v38 = vpop.f32.mrf.mxu0  ;;  %v1615_v26 = vadd.f32 %v3229_v43, %v1462_v32  ;;  %v1607_v2 = vadd.f32 %v3223_v4, %v1457_v3  ;;  %v1681_v43 = vmul.f32 0.4, %v1619_v56 }
 0x4c3   : > { %v1661_v58 = vadd.f32 %v1660_v38, %v1502_v28  ;;  %v1694_v10 = vmul.f32 0.4, %v1657_v16  ;;  %v1725_v57 = vmax.f32 %v1655_v37, %v1693_v54  ;;  %v1721_v29 = vmax.f32 %v1643_v1, %v1689_v12 }
 0x4c4   : > { %v1662_v55 = vpop.f32.mrf.mxu0  ;;  %v1720_v38 = vmax.f32 %v1639_v33, %v1688_v13  ;;  %v1609_v37 = vadd.f32 %v3225_v21, %v1457_v3  ;;  %v1680_v25 = vmul.f32 0.4, %v1615_v26  ;;  %v1679_v21 = vmul.f32 0.4, %v1613_v7 }
 0x4c5   : > { %v1663_v6 = vadd.f32 %v1662_v55, %v1502_v28  ;;  %v1695_v41 = vmul.f32 0.4, %v1661_v58  ;;  %v1726_v20 = vmax.f32 %v1657_v16, %v1694_v10  ;;  %v1631_v28 = vadd.f32 %v1630_v45, %v1477_v14  ;;  %v1452_v45 = vpop.permute.xlu0 %1451  ;;  %v1447_v16 = vpop.permute.xlu1 %1446 }
 0x4c6   : > { %v1718_v55 = vmax.f32 %v1633_v35, %v1686_v63  ;;  %v1603_v0 = vadd.f32 %v3221_v52, %v1452_v45  ;;  %v1601_v18 = vadd.f32 %v3219_v46, %v1452_v45  ;;  %v1678_v4 = vmul.f32 0.4, %v1609_v37 }
 0x4c7   : > { %v1696_v34 = vmul.f32 0.4, %v1663_v6  ;;  %v1727_v62 = vmax.f32 %v1661_v58, %v1695_v41  ;;  %v1685_v14 = vmul.f32 0.4, %v1631_v28  ;;  %v1683_v58 = vmul.f32 0.4, %v1625_v61 }
 0x4c8   : > { %v1714_v1 = vmax.f32 %v1621_v40, %v1682_v51  ;;  %v1595_v52 = vadd.f32 %v3215_v8, %v1447_v16  ;;  %v1677_v33 = vmul.f32 0.4, %v1607_v2  ;;  %v1713_v19 = vmax.f32 %v1619_v56, %v1681_v43  ;;  %v2187_v51 = vld [vmem:[%s3363_s2 + $0x1b8] sm:$0xff]  ;;  %v2189_v43 = vld [vmem:[%s3363_s2 + $0x1c8] sm:$0xff] }
 0x4c9   : > { %v1728_v49 = vmax.f32 %v1663_v6, %v1696_v34  ;;  %v1717_v6 = vmax.f32 %v1631_v28, %v1685_v14  ;;  %v1442_v41 = vpop.permute.xlu0 %1441  ;;  %v1715_v10 = vmax.f32 %v1625_v61, %v1683_v58  ;;  %v1597_v34 = vadd.f32 %v3217_v30, %v1447_v16  ;;  %v1437_v54 = vpop.permute.xlu1 %1436  ;;  %v2184_v16 = vld [vmem:[%s3363_s2 + $0x1a0] sm:$0xff]  ;;  %v2181_v58 = vld [vmem:[%s3363_s2 + $0x188] sm:$0xff] }
 0x4ca   : > { %v1676_v46 = vmul.f32 0.4, %v1603_v0  ;;  %v1712_v32 = vmax.f32 %v1615_v26, %v1680_v25  ;;  %v1589_v36 = vadd.f32 %v3211_v47, %v1442_v41  ;;  %v1675_v30 = vmul.f32 0.4, %v1601_v18  ;;  %v2192_v25 = vld [vmem:[%s3363_s2 + $0x1e0] sm:$0xff] }
 0x4cb   : > { %1828 = vmatprep.subr.mxu0 %v1728_v49  ;;  %2282 = vmatprep.subr.mxu1 %v1728_v49  ;;  %v1591_v49 = vadd.f32 %v3213_v23, %v1442_v41  ;;  %v1711_v11 = vmax.f32 %v1613_v7, %v1679_v21  ;;  %v1674_v35 = vmul.f32 0.4, %v1597_v34  ;;  %v1710_v8 = vmax.f32 %v1609_v37, %v1678_v4  ;;  %v2185_v7 = vld [vmem:[%s3363_s2 + $0x1a8] sm:$0xff]  ;;  %v2182_v37 = vld [vmem:[%s3363_s2 + $0x190] sm:$0xff] }
 0x4cc   : > { %1829 = vmatpush1.msra.mxu0 %v1727_v62  ;;  %2298 = vmatpush1.msra.mxu1 %v1727_v62  ;;  %v1585_v62 = vadd.f32 %v3209_v42, %v1437_v54  ;;  %v1673_v23 = vmul.f32 0.4, %v1595_v52  ;;  %v1709_v3 = vmax.f32 %v1607_v2, %v1677_v33  ;;  %v1708_v12 = vmax.f32 %v1603_v0, %v1676_v46  ;;  %v2188_v2 = vld [vmem:[%s3363_s2 + $0x1c0] sm:$0xff]  ;;  %v2191_v0 = vld [vmem:[%s3363_s2 + $0x1d8] sm:$0xff]  ;;  %v2194_v41 = vld [vmem:[%s3363_s2 + $0x1f0] sm:$0xff] }
 0x4cd   : > { %1830 = vmatprep.subr.mxu0 %v1726_v20  ;;  %2283 = vmatprep.subr.mxu1 %v1726_v20  ;;  %v1432_v59 = vpop.permute.xlu0 %1431  ;;  %v1583_v20 = vadd.f32 %v3207_v22, %v1437_v54  ;;  %v1672_v47 = vmul.f32 0.4, %v1591_v49  ;;  %v1671_v15 = vmul.f32 0.4, %v1589_v36  ;;  %v1707_v13 = vmax.f32 %v1601_v18, %v1675_v30  ;;  %v2195_v18 = vld [vmem:[%s3363_s2 + $0x1f8] sm:$0xff] }
 0x4ce   : > { %1831 = vmatpush1.msra.mxu0 %v1725_v57  ;;  %2299 = vmatpush1.msra.mxu1 %v1725_v57  ;;  %v1579_v28 = vadd.f32 %v3205_v53, %v1432_v59  ;;  %v1427_v57 = vpop.permute.xlu1 %1426  ;;  %v1577_v42 = vadd.f32 %v3203_v31, %v1432_v59  ;;  %v1670_v22 = vmul.f32 0.4, %v1585_v62  ;;  %v1706_v61 = vmax.f32 %v1597_v34, %v1674_v35 }
 0x4cf   : > { %1832 = vmatprep.subr.mxu0 %v1724_v5  ;;  %2284 = vmatprep.subr.mxu1 %v1724_v5  ;;  %v1573_v5 = vadd.f32 %v3201_v48, %v1427_v57  ;;  %v1571_v17 = vadd.f32 %v3199_v9, %v1427_v57  ;;  %v1669_v53 = vmul.f32 0.4, %v1583_v20  ;;  %v1704_v63 = vmax.f32 %v1591_v49, %v1672_v47 }
 0x4d0   : > { %1833 = vmatpush1.msra.mxu0 %v1723_v39  ;;  %2300 = vmatpush1.msra.mxu1 %v1723_v39  ;;  %v1705_v39 = vmax.f32 %v1595_v52, %v1673_v23  ;;  %v1668_v40 = vmul.f32 0.4, %v1579_v28  ;;  %v1667_v31 = vmul.f32 0.4, %v1577_v42  ;;  %v1702_v48 = vmax.f32 %v1585_v62, %v1670_v22 }
 0x4d1   : > { %1834 = vmatprep.subr.mxu0 %v1722_v27  ;;  %2285 = vmatprep.subr.mxu1 %v1722_v27  ;;  %v1703_v27 = vmax.f32 %v1589_v36, %v1671_v15  ;;  %v1666_v45 = vmul.f32 0.4, %v1573_v5  ;;  %v1665_v56 = vmul.f32 0.4, %v1571_v17  ;;  %v1701_v14 = vmax.f32 %v1583_v20, %v1669_v53  ;;  %v1766_v21 = vpop.permute.xlu0 %1765 }
 0x4d2   : > { %1835 = vmatpush1.msra.mxu0 %v1721_v29  ;;  %2301 = vmatpush1.msra.mxu1 %v1721_v29  ;;  %v1700_v9 = vmax.f32 %v1579_v28, %v1668_v40  ;;  %v1699_v29 = vmax.f32 %v1577_v42, %v1667_v31 }
 0x4d3   : > { %1836 = vmatprep.subr.mxu0 %v1720_v38  ;;  %2286 = vmatprep.subr.mxu1 %v1720_v38  ;;  %v1698_v26 = vmax.f32 %v1573_v5, %v1666_v45  ;;  %v1697_v24 = vmax.f32 %v1571_v17, %v1665_v56  ;;  %v2180_v38 = vld [vmem:[%s3363_s2 + $0x180] sm:$0xff] }
 0x4d4   : > { %1837 = vmatpush1.msra.mxu0 %v1719_v44  ;;  %2302 = vmatpush1.msra.mxu1 %v1719_v44  ;;  %v2186_v44 = vld [vmem:[%s3363_s2 + $0x1b0] sm:$0xff] }
 0x4d5   : > { %1838 = vmatprep.subr.mxu0 %v1718_v55  ;;  %2287 = vmatprep.subr.mxu1 %v1718_v55  ;;  %v2183_v55 = vld [vmem:[%s3363_s2 + $0x198] sm:$0xff] }
 0x4d6   : > { %1839 = vmatpush1.msra.mxu0 %v1717_v6  ;;  %2303 = vmatpush1.msra.mxu1 %v1717_v6  ;;  %v2190_v6 = vld [vmem:[%s3363_s2 + $0x1d0] sm:$0xff] }
 0x4d7   : > { %1840 = vmatprep.subr.mxu0 %v1716_v60  ;;  %2288 = vmatprep.subr.mxu1 %v1716_v60  ;;  %v2193_v60 = vld [vmem:[%s3363_s2 + $0x1e8] sm:$0xff] }
 0x4d8   : > { %1841 = vmatpush1.msra.mxu0 %v1715_v10  ;;  %2304 = vmatpush1.msra.mxu1 %v1715_v10 }
 0x4d9   : > { %1842 = vmatprep.subr.mxu0 %v1714_v1  ;;  %2289 = vmatprep.subr.mxu1 %v1714_v1 }
 0x4da   : > { %1843 = vmatpush1.msra.mxu0 %v1713_v19  ;;  %2305 = vmatpush1.msra.mxu1 %v1713_v19 }
 0x4db   : > { %1844 = vmatprep.subr.mxu0 %v1712_v32  ;;  %2290 = vmatprep.subr.mxu1 %v1712_v32 }
 0x4dc   : > { %1845 = vmatpush1.msra.mxu0 %v1711_v11  ;;  %2306 = vmatpush1.msra.mxu1 %v1711_v11 }
 0x4dd   : > { %1846 = vmatprep.subr.mxu0 %v1710_v8  ;;  %2291 = vmatprep.subr.mxu1 %v1710_v8 }
 0x4de   : > { %1847 = vmatpush1.msra.mxu0 %v1709_v3  ;;  %2307 = vmatpush1.msra.mxu1 %v1709_v3 }
 0x4df   : > { %1848 = vmatprep.subr.mxu0 %v1708_v12  ;;  %2292 = vmatprep.subr.mxu1 %v1708_v12 }
 0x4e0   : > { %1849 = vmatpush1.msra.mxu0 %v1707_v13  ;;  %2308 = vmatpush1.msra.mxu1 %v1707_v13 }
 0x4e1   : > { %1850 = vmatprep.subr.mxu0 %v1706_v61  ;;  %2293 = vmatprep.subr.mxu1 %v1706_v61 }
 0x4e2   : > { %1851 = vmatpush1.msra.mxu0 %v1705_v39  ;;  %2309 = vmatpush1.msra.mxu1 %v1705_v39 }
 0x4e3   : > { %1852 = vmatprep.subr.mxu0 %v1704_v63  ;;  %2294 = vmatprep.subr.mxu1 %v1704_v63 }
 0x4e4   : > { %1853 = vmatpush1.msra.mxu0 %v1703_v27  ;;  %2310 = vmatpush1.msra.mxu1 %v1703_v27 }
 0x4e5   : > { %1854 = vmatprep.subr.mxu0 %v1702_v48  ;;  %2295 = vmatprep.subr.mxu1 %v1702_v48 }
 0x4e6   : > { %1855 = vmatpush1.msra.mxu0 %v1701_v14  ;;  %2311 = vmatpush1.msra.mxu1 %v1701_v14 }
 0x4e7   : > { %1856 = vmatprep.subr.mxu0 %v1700_v9  ;;  %2296 = vmatprep.subr.mxu1 %v1700_v9 }
 0x4e8   : > { %1857 = vmatpush1.msra.mxu0 %v1699_v29  ;;  %2312 = vmatpush1.msra.mxu1 %v1699_v29 }
 0x4e9   : > { %1858 = vmatprep.subr.mxu0 %v1698_v26  ;;  %2297 = vmatprep.subr.mxu1 %v1698_v26 }
 0x4ea   : > { %1859 = vmatpush1.msra.mxu0 %v1697_v24  ;;  %2313 = vmatpush1.msra.mxu1 %v1697_v24 }
 0x4eb   : > { %1893 = vmatmul.mubr.f32.vlgmr.msra.gmra.mxu0 %v2180_v38  ;;  %1911 = vmatmul.mubr.f32.vlgmr.msra.gmra.mxu1 %v2184_v16 }
 0x4ec   : > { %1914 = vmatprep.mubr.f32.mxu1 %v2428_v50  ;;  %1898 = vmatprep.mubr.f32.mxu0 %v2428_v50 }
 0x4ef   : > { %1915 = vmatmul.mubr.f32.gmra.mxu1 %v2185_v7  ;;  %1899 = vmatmul.mubr.f32.gmra.mxu0 %v2181_v58 }
 0x4f0   : > { %1918 = vmatprep.mubr.f32.mxu1 %v2428_v50  ;;  %1902 = vmatprep.mubr.f32.mxu0 %v2428_v50 }
 0x4f3   : > { %1919 = vmatmul.mubr.f32.gmra.mxu1 %v2186_v44  ;;  %1903 = vmatmul.mubr.f32.gmra.mxu0 %v2182_v37 }
 0x4f4   : > { %1922 = vmatprep.mubr.f32.mxu1 %v2428_v50  ;;  %1906 = vmatprep.mubr.f32.mxu0 %v2428_v50 }
 0x4f7   : > { %1923 = vmatmul.mubr.f32.gmra.mxu1 %v2187_v51  ;;  %1907 = vmatmul.mubr.f32.gmra.mxu0 %v2183_v55 }
 0x4f8   : > { %1926 = vmatprep.mubr.f32.mxu1 %v2428_v50 }
 0x4fb   : > { %1927 = vmatmul.mubr.f32.gmra.mxu1 %v2188_v2 }
 0x4fc   : > { %1930 = vmatprep.mubr.f32.mxu1 %v2428_v50 }
 0x4ff   : > { %1931 = vmatmul.mubr.f32.gmra.mxu1 %v2189_v43 }
 0x500   : > { %1934 = vmatprep.mubr.f32.mxu1 %v2428_v50 }
 0x503   : > { %1935 = vmatmul.mubr.f32.gmra.mxu1 %v2190_v6 }
 0x504   : > { %1938 = vmatprep.mubr.f32.mxu1 %v2428_v50 }
 0x507   : > { %1939 = vmatmul.mubr.f32.gmra.mxu1 %v2191_v0 }
 0x508   : > { %1942 = vmatprep.mubr.f32.mxu1 %v2428_v50 }
 0x50b   : > { %1943 = vmatmul.mubr.f32.gmra.mxu1 %v2192_v25 }
 0x50c   : > { %1946 = vmatprep.mubr.f32.mxu1 %v2428_v50 }
 0x50f   : > { %1947 = vmatmul.mubr.f32.gmra.mxu1 %v2193_v60 }
 0x510   : > { %1950 = vmatprep.mubr.f32.mxu1 %v2428_v50 }
 0x513   : > { %1951 = vmatmul.mubr.f32.gmra.mxu1 %v2194_v41 }
 0x514   : > { %1954 = vmatprep.mubr.f32.mxu1 %v2428_v50 }
 0x517   : > { %1955 = vmatmul.mubr.f32.gmra.mxu1 %v2195_v18 }
 0x5ab   : > { %v1894_v10 = vpop.f32.mrf.mxu0  ;;  %v1912_v34 = vpop.f32.mrf.mxu1 }
 0x5ac   : > { %v1895_v4 = vadd.f32 %v1894_v10, %v1766_v21 }
 0x5ad   : > { %v1896_v1 = vpop.f32.mrf.mxu0  ;;  %v1913_v54 = vpop.f32.mrf.mxu1 }
 0x5ae   : > { %v1959_v52 = vsub.f32 0.0, %v1895_v4  ;;  %v1897_v33 = vadd.f32 %v1896_v1, %v1766_v21 }
 0x5af   : > { %v1916_v19 = vpop.f32.mrf.mxu1  ;;  %v1900_v49 = vpop.f32.mrf.mxu0 }
 0x5b0   : > { %v1961_v46 = vmul.f32 1.442695, %v1959_v52  ;;  %v1960_v32 = vsub.f32 0.0, %v1897_v33 }
 0x5b1   : > { %v1917_v36 = vpop.f32.mrf.mxu1  ;;  %v1901_v30 = vpop.f32.mrf.mxu0 }
 0x5b2   : > { %2357 = vpow2.f32 %v1961_v46  ;;  %v1963_v50 = vmul.f32 1.442695, %v1960_v32 }
 0x5b3   : > { %v1920_v11 = vpop.f32.mrf.mxu1  ;;  %v1904_v62 = vpop.f32.mrf.mxu0 }
 0x5b4   : > { %2359 = vpow2.f32 %v1963_v50 }
 0x5b5   : > { %v1921_v35 = vpop.f32.mrf.mxu1  ;;  %v1905_v8 = vpop.f32.mrf.mxu0 }
 0x5b7   : > { %v1924_v59 = vpop.f32.mrf.mxu1  ;;  %v1908_v20 = vpop.f32.mrf.mxu0 }
 0x5b9   : > { %v1925_v23 = vpop.f32.mrf.mxu1  ;;  %v1909_v3 = vpop.f32.mrf.mxu0 }
 0x5bb   : > { %v1928_v28 = vpop.f32.mrf.mxu1 }
 0x5bd   : > { %v1929_v47 = vpop.f32.mrf.mxu1 }
 0x5bf   : > { %v2358_v12 = vpop.eup %2357  ;;  %v1932_v57 = vpop.f32.mrf.mxu1 }
 0x5c0   : > { %v1965_v42 = vadd.f32 1.0, %v2358_v12 }
 0x5c1   : > { %v2360_v15 = vpop.eup %2359  ;;  %v1933_v13 = vpop.f32.mrf.mxu1 }
 0x5c2   : > { %2361 = vrcp.f32 %v1965_v42  ;;  %v1966_v5 = vadd.f32 1.0, %v2360_v15 }
 0x5c3   : > { %v1936_v22 = vpop.f32.mrf.mxu1 }
 0x5c4   : > { %2363 = vrcp.f32 %v1966_v5 }
 0x5c5   : > { %v1937_v61 = vpop.f32.mrf.mxu1 }
 0x5c7   : > { %v1940_v17 = vpop.f32.mrf.mxu1 }
 0x5c9   : > { %v1941_v53 = vpop.f32.mrf.mxu1 }
 0x5cb   : > { %v1944_v39 = vpop.f32.mrf.mxu1 }
 0x5cd   : > { %v1945_v40 = vpop.f32.mrf.mxu1 }
 0x5cf   : > { %v2362_v63 = vpop.eup %2361  ;;  %v1948_v31 = vpop.f32.mrf.mxu1 }
 0x5d0   : > { %1969 = vst [vmem:[%s191_s13] sm:$0xff] %v2362_v63 }
 0x5d1   : > { %v2364_v27 = vpop.eup %2363  ;;  %v1949_v45 = vpop.f32.mrf.mxu1 }
 0x5d2   : > { %1970 = vst [vmem:[%s191_s13 + $0x8] sm:$0xff] %v2364_v27 }
 0x5d3   : > { %v1952_v48 = vpop.f32.mrf.mxu1 }
 0x5d4   : > { %2378 = shalt.err (!%p2375_p3)
}
 0x5d5   : > { %s2379_s5 = scalar_lea.hbm %s3320_s27, 256  ;;  %s2383_s8 = scalar_lea.hbm %s3365_s4, 512 }
 0x5d6   : > { %p2380_p4 = scmp.ne.s32.totalorder %s3320_s27, %s2379_s5  ;;  %p2384_p9 = scmp.lt.s32.totalorder %s3320_s27, %s3365_s4 }
 0x5d7   : > { %p2385_p10 = scmp.lt.s32.totalorder %s2383_s8, %s2379_s5 }
 0x5d8   : > { %p2381_p7 = pnand %p2380_p4, %p2493_p5 }
 0x5d9   : > { %p2386_p11 = por %p2385_p10, %p2384_p9 }
 0x5da   : > { %p2382_p8 = pneg %p2381_p7 }
 0x5dc   : > { %p2387_p12 = pnand %p2386_p11, %p2382_p8 }
 0x5de   : > { %2390 = shalt.err (!%p2387_p12)
}
 0x5df   : > { %2314 = dma.vmem_to_hbm [thread:$0]  (%p2493_p5), %s3322_s14, 256, %s3320_s27, %s1972_s19   ;;  %v1953_v56 = vpop.f32.mrf.mxu1 }
 0x5e1   : > { %v1956_v14 = vpop.f32.mrf.mxu1 }
 0x5e3   : > { %v1957_v9 = vpop.f32.mrf.mxu1 }
 0x5e4 PF: > { %p2320_p13 = scmp.ge.s32.totalorder %s2425_s18, 2  ;;  %s1998_s11 = sand.u32 1, %s2413_s15  }
 0x5e5   : > { %s1999_s12 = scalar_lea.sflag [#allocation3], %s1998_s11 }
 0x5e6   : > { %p2317_p0 = pnand %p2320_p13, %p2497_p6 }
 0x5e8   : > { %p2318_p1 = pneg %p2317_p0 }
 0x5ea   : > { %2408 = dma.done.wait (%p2318_p1), %s1999_s12, 256  }
 0x5eb   : > { %2410 = vsyncadd (%p2318_p1), %s1999_s12, 4294967040  ;;  %p14_p5 = scmp.ge.s32.totalorder %s2480_s21, 4   ;;  %s3368_s15 = smov %s2417_s16 }
 0x5ec   : > { %s3369_s16 = smov %s2421_s17  ;;  %s3370_s17 = smov %s2491_s24 }
 0x5ed   : > { %s3371_s18 = smov %s2480_s21  ;;  %16 = sbr.rel (!%p14_p5) target bundleno = 3 (0x3), region = 78 }
 0x5f2   :  { %2004 = vsyncpa [#allocation3], 1 }
 0x5f3   :  { %2006 = vsyncpa [#allocation3 + $0x1], 1 }

</bundles_post_ra>
